<compile_context>
chip_gen: v6e
topology: v6e:2x2x1
jax: 0.10.0
libtpu: 0.0.40
codegen_flags: <defaults>
</compile_context>

<pallas_src>
import math
import functools

import numpy as np
import jax
import jax.numpy as jnp
from jax import lax
from jax.experimental import pallas as pl
from jax.experimental.pallas import tpu as pltpu

F32 = jnp.float32
BF16 = jnp.bfloat16
LN_EPS = 1e-5
NEG_INF = -1e20

_PAR1 = pltpu.CompilerParams(dimension_semantics=("parallel",))


# ----------------------------- helpers -----------------------------

def _round_up(x, m):
    return ((x + m - 1) // m) * m


def _row_plan(M, cap=512):
    """Return (padded_M, row_tile); row_tile divides padded_M, both multiples of 8.
    cap=512 is a conservative cross-generation default (64 MiB VMEM on v7x).
    TODO(synk): gate the cap on pltpu.get_tpu_info().vmem_capacity_bytes (1024 on v6e)."""
    if M <= cap:
        Mp = _round_up(M, 8)
        return Mp, Mp
    return _round_up(M, cap), cap


def _pad_rows(x2, Mp):
    M = x2.shape[0]
    return x2 if Mp == M else jnp.pad(x2, ((0, Mp - M), (0, 0)))


def _layernorm(y, g, b):
    mu = jnp.mean(y, axis=-1, keepdims=True)
    var = jnp.mean(jnp.square(y - mu), axis=-1, keepdims=True)
    return (y - mu) * lax.rsqrt(var + LN_EPS) * g + b


def _attn_heads(q, k, v, mask, n_heads, hd):
    """Per-head attention on 2D (L, E) projections already resident in VMEM.
    Returns merged-head context (Lq, E).  Matmuls: bf16 operands / f32 accumulation;
    scores, mask fill and softmax stay in f32."""
    # TODO(synk): at real head_dim / sequence lengths, switch to a head-batched einsum with
    # flash-style Lk tiling (online-softmax accumulator in VMEM scratch); the unrolled
    # per-head 2D matmuls keep this demo-sized kernel simple and guaranteed to lower.
    ctx = []
    for h in range(n_heads):
        sl = slice(h * hd, (h + 1) * hd)
        qh = q[:, sl].astype(BF16)
        kh = k[:, sl].astype(BF16)
        vh = v[:, sl].astype(BF16)
        # contract on last dim of both operands (no explicit .T -> no XLU transpose)
        s = lax.dot_general(qh, kh, (((1,), (1,)), ((), ())),
                            preferred_element_type=F32)           # (Lq, Lk) f32
        if mask is not None:
            s = jnp.where(mask == 0.0, F32(NEG_INF), s)
        s = s - jnp.max(s, axis=-1, keepdims=True)
        p = jnp.exp(s)
        p = p * pl.reciprocal(jnp.sum(p, axis=-1, keepdims=True), approx=True)
        ctx.append(jnp.dot(p.astype(BF16), vh, preferred_element_type=F32))  # (Lq, hd)
    return jnp.concatenate(ctx, axis=-1)                                     # (Lq, E)


# ----------------------------- Pallas kernels -----------------------------

def _self_attn_ln_kernel(*refs, n_heads, scale, has_mask):
    # One batch element per grid step: LayerNorm(out_proj(MHA_self(x)) + bo + x)
    if has_mask:
        x_ref, wqkv_ref, wo_ref, bo_ref, g_ref, beta_ref, m_ref, o_ref = refs
        mask = m_ref[...]
    else:
        x_ref, wqkv_ref, wo_ref, bo_ref, g_ref, beta_ref, o_ref = refs
        mask = None
    L, E = x_ref.shape
    hd = E // n_heads
    x = x_ref[...]                                                     # (L, E) f32
    # fused QKV projection against pre-concatenated bf16 [Wq | Wk | Wv]
    qkv = jnp.dot(x.astype(BF16), wqkv_ref[...],
                  preferred_element_type=F32)                          # (L, 3E) f32
    q = qkv[:, :E] * scale                                             # fold 1/sqrt(hd) into Q
    k = qkv[:, E:2 * E]
    v = qkv[:, 2 * E:]
    ctx = _attn_heads(q, k, v, mask, n_heads, hd)                      # (L, E) f32, lane-dense
    y = jnp.dot(ctx.astype(BF16), wo_ref[...], preferred_element_type=F32)
    y = y + bo_ref[...] + x                                            # residual = x
    o_ref[...] = _layernorm(y, g_ref[...], beta_ref[...]).astype(o_ref.dtype)


def _cross_attn_ln_kernel(q_ref, k_ref, v_ref, wq_ref, wk_ref, wv_ref, wo_ref,
                          bo_ref, g_ref, beta_ref, o_ref, *, n_heads, scale):
    # One batch element per grid step: LayerNorm(out_proj(MHA(q_src,k_src,v_src)) + bo + v_src)
    Lq, E = q_ref.shape
    hd = E // n_heads
    v_in = v_ref[...]                                                  # (Lv, E) f32, residual
    q = jnp.dot(q_ref[...].astype(BF16), wq_ref[...], preferred_element_type=F32) * scale
    k = jnp.dot(k_ref[...].astype(BF16), wk_ref[...], preferred_element_type=F32)
    v = jnp.dot(v_in.astype(BF16), wv_ref[...], preferred_element_type=F32)
    ctx = _attn_heads(q, k, v, None, n_heads, hd)                      # (Lq, E)
    y = jnp.dot(ctx.astype(BF16), wo_ref[...], preferred_element_type=F32)
    y = y + bo_ref[...] + v_in
    o_ref[...] = _layernorm(y, g_ref[...], beta_ref[...]).astype(o_ref.dtype)


def _ffn_add_ln_kernel(x_ref, w1_ref, b1_ref, w2_ref, b2_ref, g_ref, beta_ref, o_ref):
    # LayerNorm( relu(x @ w1 + b1) @ w2 + b2 + x )
    x = x_ref[...]                                                     # (tm, E) f32
    h = jnp.dot(x.astype(BF16), w1_ref[...], preferred_element_type=F32) + b1_ref[...]
    h = jnp.maximum(h, 0.0)
    y = jnp.dot(h.astype(BF16), w2_ref[...], preferred_element_type=F32) + b2_ref[...] + x
    o_ref[...] = _layernorm(y, g_ref[...], beta_ref[...]).astype(o_ref.dtype)


def _logits_softmax_kernel(x_ref, w_ref, b_ref, o_ref):
    # exact softmax(x @ w + b) along the (padded, lane-dense) vocab axis
    y = jnp.dot(x_ref[...].astype(BF16), w_ref[...], preferred_element_type=F32) + b_ref[...]
    y = y - jnp.max(y, axis=-1, keepdims=True)
    e = jnp.exp(y)
    o_ref[...] = (e / jnp.sum(e, axis=-1, keepdims=True)).astype(o_ref.dtype)


# ----------------------------- kernel wrappers -----------------------------

def self_attn_add_layernorm(x, attn, g, beta, mask, n_heads):
    """layer_norm(out_proj(self-MHA(x)) + x) in one pallas_call, grid over batch."""
    B, L, E = x.shape
    has_mask = mask is not None
    scale = 1.0 / math.sqrt(E // n_heads)
    in_specs = [
        pl.BlockSpec((None, L, E), lambda b: (b, 0, 0)),     # x: one batch element per step
        pl.BlockSpec((E, 3 * E), lambda b: (0, 0)),          # fused [Wq|Wk|Wv], bf16, resident
        pl.BlockSpec((E, E), lambda b: (0, 0)),              # Wo
        pl.BlockSpec((1, E), lambda b: (0, 0)),              # bo
        pl.BlockSpec((1, E), lambda b: (0, 0)),              # ln gamma
        pl.BlockSpec((1, E), lambda b: (0, 0)),              # ln beta
    ]
    args = [x, attn['wqkv'], attn['wo'], attn['bo'].reshape(1, E),
            g.reshape(1, E), beta.reshape(1, E)]
    if has_mask:
        in_specs.append(pl.BlockSpec((L, L), lambda b: (0, 0)))
        args.append(mask)
    return pl.pallas_call(
        functools.partial(_self_attn_ln_kernel, n_heads=n_heads, scale=scale,
                          has_mask=has_mask),
        out_shape=jax.ShapeDtypeStruct((B, L, E), F32),
        grid=(B,),
        in_specs=in_specs,
        out_specs=pl.BlockSpec((None, L, E), lambda b: (b, 0, 0)),
        compiler_params=_PAR1,
    )(*args)


def cross_attn_add_layernorm(q_src, k_src, v_src, attn, g, beta, n_heads):
    """layer_norm(out_proj(MHA(q_src, k_src, v_src)) + v_src) in one pallas_call."""
    B, Lq, E = q_src.shape
    Lk = k_src.shape[1]
    Lv = v_src.shape[1]
    assert Lq == Lv, "residual add requires query_len == value_len (as in the reference)"
    scale = 1.0 / math.sqrt(E // n_heads)
    return pl.pallas_call(
        functools.partial(_cross_attn_ln_kernel, n_heads=n_heads, scale=scale),
        out_shape=jax.ShapeDtypeStruct((B, Lq, E), F32),
        grid=(B,),
        in_specs=[
            pl.BlockSpec((None, Lq, E), lambda b: (b, 0, 0)),
            pl.BlockSpec((None, Lk, E), lambda b: (b, 0, 0)),
            pl.BlockSpec((None, Lv, E), lambda b: (b, 0, 0)),
            pl.BlockSpec((E, E), lambda b: (0, 0)),
            pl.BlockSpec((E, E), lambda b: (0, 0)),
            pl.BlockSpec((E, E), lambda b: (0, 0)),
            pl.BlockSpec((E, E), lambda b: (0, 0)),
            pl.BlockSpec((1, E), lambda b: (0, 0)),
            pl.BlockSpec((1, E), lambda b: (0, 0)),
            pl.BlockSpec((1, E), lambda b: (0, 0)),
        ],
        out_specs=pl.BlockSpec((None, Lq, E), lambda b: (b, 0, 0)),
        compiler_params=_PAR1,
    )(q_src, k_src, v_src, attn['wq'], attn['wk'], attn['wv'], attn['wo'],
      attn['bo'].reshape(1, E), g.reshape(1, E), beta.reshape(1, E))


def ffn_add_layernorm(x, w1, b1, w2, b2, g, beta):
    """Fused feed-forward block: layer_norm(FFN(x) + x), row-tiled."""
    orig = x.shape
    E = orig[-1]
    H = w1.shape[1]
    x2 = x.reshape(-1, E)
    M = x2.shape[0]
    Mp, tm = _row_plan(M)
    x2 = _pad_rows(x2, Mp)
    # TODO(synk): on v7x at large E, tile the hidden dim H with a second 'arbitrary' axis
    # (accumulate in VMEM scratch) so both weights fit the 64 MiB VMEM budget.
    out = pl.pallas_call(
        _ffn_add_ln_kernel,
        out_shape=jax.ShapeDtypeStruct((Mp, E), F32),
        grid=(Mp // tm,),
        in_specs=[pl.BlockSpec((tm, E), lambda i: (i, 0)),
                  pl.BlockSpec((E, H), lambda i: (0, 0)),
                  pl.BlockSpec((1, H), lambda i: (0, 0)),
                  pl.BlockSpec((H, E), lambda i: (0, 0)),
                  pl.BlockSpec((1, E), lambda i: (0, 0)),
                  pl.BlockSpec((1, E), lambda i: (0, 0)),
                  pl.BlockSpec((1, E), lambda i: (0, 0))],
        out_specs=pl.BlockSpec((tm, E), lambda i: (i, 0)),
        compiler_params=_PAR1,
    )(x2, w1, b1.reshape(1, H), w2, b2.reshape(1, E), g.reshape(1, E), beta.reshape(1, E))
    if Mp != M:
        out = out[:M]
    return out.reshape(orig)


def logits_softmax(x, w_pad, b_pad, vocab):
    """Fused final projection + exact softmax; vocab padded to a 128-lane multiple
    (zero weight columns + -1e30 bias) so stores are lane-dense and softmax is unchanged."""
    # TODO(synk): for realistic vocab sizes (32k+), tile the vocab with an 'arbitrary' grid
    # axis and an online / two-pass softmax instead of holding the full (E, Vp) weight block.
    orig = x.shape
    E = orig[-1]
    Vp = w_pad.shape[1]
    x2 = x.reshape(-1, E)
    M = x2.shape[0]
    Mp, tm = _row_plan(M)
    x2 = _pad_rows(x2, Mp)
    out = pl.pallas_call(
        _logits_softmax_kernel,
        out_shape=jax.ShapeDtypeStruct((Mp, Vp), F32),
        grid=(Mp // tm,),
        in_specs=[pl.BlockSpec((tm, E), lambda i: (i, 0)),
                  pl.BlockSpec((E, Vp), lambda i: (0, 0)),
                  pl.BlockSpec((1, Vp), lambda i: (0, 0))],
        out_specs=pl.BlockSpec((tm, Vp), lambda i: (i, 0)),
        compiler_params=_PAR1,
    )(x2, w_pad, b_pad.reshape(1, Vp))
    out = out[:M, :vocab]
    return out.reshape(orig[:-1] + (vocab,))


# ----------------------------- model blocks (glue + kernels) -----------------------------

def transformer_block(p, key, query, value, n_heads):
    # reference quirk: self.attention(key, query, value) -> MHA(query=key, key=query,
    # value=value), mask omitted -> None; residual = value; dropouts are identity.
    attn = p['attn']
    if (key is query) and (query is value):
        normed = self_attn_add_layernorm(key, attn, p['ln1_g'], p['ln1_b'], None, n_heads)
    else:
        normed = cross_attn_add_layernorm(key, query, value, attn,
                                          p['ln1_g'], p['ln1_b'], n_heads)
    return ffn_add_layernorm(normed, p['ff1_w'], p['ff1_b'],
                             p['ff2_w'], p['ff2_b'], p['ln2_g'], p['ln2_b'])


def decoder_block(p, key, query, x, mask, n_heads):
    # masked self-attention over x (= enc_out per the reference's call order) + Add&Norm,
    # fused into one pallas_call; then the (cross-ish) transformer block.
    value = self_attn_add_layernorm(x, p['attn'], p['ln_g'], p['ln_b'], mask, n_heads)
    return transformer_block(p['tb'], key, query, value, n_heads)


def positional_table(max_len, E):
    # mirrors the (quirky) PyTorch reference formula exactly
    pe = np.zeros((max_len, E), np.float32)
    for pos in range(max_len):
        for i in range(0, E, 2):
            pe[pos, i] = math.sin(pos / 10000 ** (2 * i / E))
            if i + 1 < E:
                pe[pos, i + 1] = math.cos(pos / 10000 ** (2 * (i + 1) / E))
    return jnp.asarray(pe)[None]  # [1, max_len, E]


def encoder_forward(params, src, n_heads):
    E = params['enc_embed'].shape[1]
    # TODO(synk): embedding gather + positional add stay as XLA glue (no clean Pallas win).
    x = jnp.take(params['enc_embed'], src, axis=0)
    x = x * math.sqrt(E) + params['enc_pe'][:, :src.shape[1]]
    for lp in params['enc_layers']:
        x = transformer_block(lp, x, x, x, n_heads)
    return x


def decoder_forward(params, trg, enc_out, mask, n_heads, tgt_vocab):
    E = params['dec_embed'].shape[1]
    x = jnp.take(params['dec_embed'], trg, axis=0)
    x = x * math.sqrt(E) + params['dec_pe'][:, :trg.shape[1]]
    # dropout = identity
    for lp in params['dec_layers']:
        x = decoder_block(lp, enc_out, x, enc_out, mask, n_heads)
    return logits_softmax(x, params['fc_w_pad'], params['fc_b_pad'], tgt_vocab)


def transformer_forward(params, src, trg, n_heads, tgt_vocab):
    Lt = trg.shape[1]
    # causal look-ahead mask; identical across batch so a single (Lt, Lt) table suffices
    trg_mask = jnp.tril(jnp.ones((Lt, Lt), F32))
    enc_out = encoder_forward(params, src, n_heads)
    return decoder_forward(params, trg, enc_out, trg_mask, n_heads, tgt_vocab)


# ----------------------------- deterministic parameter init -----------------------------

def _dense(key, fan_in, fan_out, dtype=BF16):
    return (0.02 * jax.random.normal(key, (fan_in, fan_out), F32)).astype(dtype)


def init_mha(key, E):
    k = jax.random.split(key, 4)
    wq, wk, wv = _dense(k[0], E, E), _dense(k[1], E, E), _dense(k[2], E, E)
    return dict(wq=wq, wk=wk, wv=wv,
                wqkv=jnp.concatenate([wq, wk, wv], axis=1),   # pre-concatenated fused QKV (bf16)
                wo=_dense(k[3], E, E), bo=jnp.zeros((E,), F32))


def init_tblock(key, E, expansion):
    k = jax.random.split(key, 3)
    H = expansion * E
    return dict(attn=init_mha(k[0], E),
                ln1_g=jnp.ones((E,), F32), ln1_b=jnp.zeros((E,), F32),
                ln2_g=jnp.ones((E,), F32), ln2_b=jnp.zeros((E,), F32),
                ff1_w=_dense(k[1], E, H), ff1_b=jnp.zeros((H,), F32),
                ff2_w=_dense(k[2], H, E), ff2_b=jnp.zeros((E,), F32))


def init_dblock(key, E, expansion):
    k = jax.random.split(key, 2)
    return dict(attn=init_mha(k[0], E),
                ln_g=jnp.ones((E,), F32), ln_b=jnp.zeros((E,), F32),
                tb=init_tblock(k[1], E, expansion))


def init_transformer(key, E, src_vocab, tgt_vocab, en_seq, de_seq, num_layers, expansion):
    keys = jax.random.split(key, 2 * num_layers + 3)
    enc_layers = [init_tblock(keys[i], E, expansion) for i in range(num_layers)]
    dec_layers = [init_dblock(keys[num_layers + i], E, expansion) for i in range(num_layers)]
    fc_w = _dense(keys[-1], E, tgt_vocab)                     # bf16
    fc_b = jnp.zeros((tgt_vocab,), F32)
    Vp = _round_up(tgt_vocab, 128)                            # lane-dense vocab padding
    fc_w_pad = jnp.pad(fc_w, ((0, 0), (0, Vp - tgt_vocab)))
    fc_b_pad = jnp.pad(fc_b, (0, Vp - tgt_vocab), constant_values=-1e30)
    return dict(
        enc_embed=0.02 * jax.random.normal(keys[-3], (src_vocab, E), F32),
        dec_embed=0.02 * jax.random.normal(keys[-2], (tgt_vocab, E), F32),
        enc_pe=positional_table(en_seq, E),
        dec_pe=positional_table(de_seq, E),
        enc_layers=enc_layers,
        dec_layers=dec_layers,
        fc_w_pad=fc_w_pad,
        fc_b_pad=fc_b_pad,
    )


# ----------------------------- demo -----------------------------

if __name__ == "__main__":
    EMBED = 32
    N_HEADS = 4
    NUM_LAYERS = 2
    EXPANSION = 4
    SRC_VOCAB = 50
    TGT_VOCAB = 60
    SEQ = 8          # src and trg sequence lengths must match (reference broadcasts the trg mask)
    BATCH = 2

    root = jax.random.PRNGKey(0)
    kp, ks, kt = jax.random.split(root, 3)
    params = init_transformer(kp, EMBED, SRC_VOCAB, TGT_VOCAB, SEQ, SEQ, NUM_LAYERS, EXPANSION)

    src = jax.random.randint(ks, (BATCH, SEQ), 0, SRC_VOCAB, dtype=jnp.int32)
    trg = jax.random.randint(kt, (BATCH, SEQ), 0, TGT_VOCAB, dtype=jnp.int32)

    fwd = jax.jit(functools.partial(transformer_forward, n_heads=N_HEADS, tgt_vocab=TGT_VOCAB))
    out = fwd(params, src, trg)
    out = jax.block_until_ready(out)

    assert out.shape == (BATCH, SEQ, TGT_VOCAB), out.shape
    assert bool(jnp.all(jnp.isfinite(out)))
    # rows of the output are (exact-division) softmax distributions over the target vocab
    assert bool(jnp.allclose(jnp.sum(out, axis=-1), 1.0, atol=1e-4))
    print("KERNEL_OK")
</pallas_src>

<mosaic_0001>
module attributes {stable_mosaic.version = 11 : i64} {
  func.func @_ffn_add_ln_kernel(%arg0: i32, %arg1: memref<16x32xf32, #tpu.memory_space<vmem>>, %arg2: memref<32x128xbf16, #tpu.memory_space<vmem>>, %arg3: memref<1x128xf32, #tpu.memory_space<vmem>>, %arg4: memref<128x32xbf16, #tpu.memory_space<vmem>>, %arg5: memref<1x32xf32, #tpu.memory_space<vmem>>, %arg6: memref<1x32xf32, #tpu.memory_space<vmem>>, %arg7: memref<1x32xf32, #tpu.memory_space<vmem>>, %arg8: memref<16x32xf32, #tpu.memory_space<vmem>>) attributes {dimension_semantics = [#tpu.dimension_semantics<parallel>], iteration_bounds = array<i64: 1>, scalar_prefetch = 0 : i64, scratch_operands = 0 : i64, tpu.core_type = #tpu.core_type<tc>, window_params = [{transform_indices = @transform_0, window_bounds = array<i64: 16, 32>}, {pipeline_mode = #tpu.pipeline_mode<synchronous>, transform_indices = @transform_1, window_bounds = array<i64: 32, 128>}, {pipeline_mode = #tpu.pipeline_mode<synchronous>, transform_indices = @transform_2, window_bounds = array<i64: 1, 128>}, {pipeline_mode = #tpu.pipeline_mode<synchronous>, transform_indices = @transform_3, window_bounds = array<i64: 128, 32>}, {pipeline_mode = #tpu.pipeline_mode<synchronous>, transform_indices = @transform_4, window_bounds = array<i64: 1, 32>}, {pipeline_mode = #tpu.pipeline_mode<synchronous>, transform_indices = @transform_5, window_bounds = array<i64: 1, 32>}, {pipeline_mode = #tpu.pipeline_mode<synchronous>, transform_indices = @transform_6, window_bounds = array<i64: 1, 32>}, {transform_indices = @transform_7, window_bounds = array<i64: 16, 32>}]} {
    %c0 = arith.constant 0 : index
    %c0_0 = arith.constant 0 : index
    %0 = vector.load %arg1[%c0, %c0_0] : memref<16x32xf32, #tpu.memory_space<vmem>>, vector<16x32xf32>
    %1 = arith.truncf %0 : vector<16x32xf32> to vector<16x32xbf16>
    %c0_1 = arith.constant 0 : index
    %c0_2 = arith.constant 0 : index
    %2 = vector.load %arg2[%c0_1, %c0_2] : memref<32x128xbf16, #tpu.memory_space<vmem>>, vector<32x128xbf16>
    %cst = arith.constant dense<0.000000e+00> : vector<16x128xf32>
    %3 = tpu.matmul %1, %2, %cst {dimension_numbers = #tpu.dot_dimension_numbers<[1], [0], [0], [1], [0, 0, 1, 1], [], []>} : vector<16x32xbf16>, vector<32x128xbf16>, vector<16x128xf32> -> vector<16x128xf32>
    %c0_3 = arith.constant 0 : index
    %c0_4 = arith.constant 0 : index
    %4 = vector.load %arg3[%c0_3, %c0_4] : memref<1x128xf32, #tpu.memory_space<vmem>>, vector<1x128xf32>
    %5 = vector.broadcast %4 : vector<1x128xf32> to vector<16x128xf32>
    %6 = arith.addf %3, %5 : vector<16x128xf32>
    %cst_5 = arith.constant 0.000000e+00 : f32
    %7 = vector.broadcast %cst_5 : f32 to vector<16x128xf32>
    %8 = arith.maximumf %6, %7 : vector<16x128xf32>
    %9 = arith.truncf %8 : vector<16x128xf32> to vector<16x128xbf16>
    %c0_6 = arith.constant 0 : index
    %c0_7 = arith.constant 0 : index
    %10 = vector.load %arg4[%c0_6, %c0_7] : memref<128x32xbf16, #tpu.memory_space<vmem>>, vector<128x32xbf16>
    %cst_8 = arith.constant dense<0.000000e+00> : vector<16x32xf32>
    %11 = tpu.matmul %9, %10, %cst_8 {dimension_numbers = #tpu.dot_dimension_numbers<[1], [0], [0], [1], [0, 0, 1, 1], [], []>} : vector<16x128xbf16>, vector<128x32xbf16>, vector<16x32xf32> -> vector<16x32xf32>
    %c0_9 = arith.constant 0 : index
    %c0_10 = arith.constant 0 : index
    %12 = vector.load %arg5[%c0_9, %c0_10] : memref<1x32xf32, #tpu.memory_space<vmem>>, vector<1x32xf32>
    %13 = vector.broadcast %12 : vector<1x32xf32> to vector<16x32xf32>
    %14 = arith.addf %11, %13 : vector<16x32xf32>
    %15 = arith.addf %14, %0 : vector<16x32xf32>
    %c0_11 = arith.constant 0 : index
    %c0_12 = arith.constant 0 : index
    %16 = vector.load %arg6[%c0_11, %c0_12] : memref<1x32xf32, #tpu.memory_space<vmem>>, vector<1x32xf32>
    %c0_13 = arith.constant 0 : index
    %c0_14 = arith.constant 0 : index
    %17 = vector.load %arg7[%c0_13, %c0_14] : memref<1x32xf32, #tpu.memory_space<vmem>>, vector<1x32xf32>
    %cst_15 = arith.constant dense<0.000000e+00> : vector<16xf32>
    %18 = vector.multi_reduction <add>, %15, %cst_15 [1] : vector<16x32xf32> to vector<16xf32>
    %19 = vector.shape_cast %18 : vector<16xf32> to vector<16x1xf32>
    %cst_16 = arith.constant 3.200000e+01 : f32
    %20 = vector.broadcast %cst_16 : f32 to vector<16x1xf32>
    %21 = arith.divf %19, %20 : vector<16x1xf32>
    %22 = vector.broadcast %21 : vector<16x1xf32> to vector<16x32xf32>
    %23 = arith.subf %15, %22 : vector<16x32xf32>
    %24 = arith.mulf %23, %23 : vector<16x32xf32>
    %cst_17 = arith.constant dense<0.000000e+00> : vector<16xf32>
    %25 = vector.multi_reduction <add>, %24, %cst_17 [1] : vector<16x32xf32> to vector<16xf32>
    %26 = vector.shape_cast %25 : vector<16xf32> to vector<16x1xf32>
    %cst_18 = arith.constant 3.200000e+01 : f32
    %27 = vector.broadcast %cst_18 : f32 to vector<16x1xf32>
    %28 = arith.divf %26, %27 : vector<16x1xf32>
    %29 = vector.broadcast %21 : vector<16x1xf32> to vector<16x32xf32>
    %30 = arith.subf %15, %29 : vector<16x32xf32>
    %cst_19 = arith.constant 9.99999974E-6 : f32
    %31 = vector.broadcast %cst_19 : f32 to vector<16x1xf32>
    %32 = arith.addf %28, %31 : vector<16x1xf32>
    %33 = math.rsqrt %32 : vector<16x1xf32>
    %34 = vector.broadcast %33 : vector<16x1xf32> to vector<16x32xf32>
    %35 = arith.mulf %30, %34 : vector<16x32xf32>
    %36 = vector.broadcast %16 : vector<1x32xf32> to vector<16x32xf32>
    %37 = arith.mulf %35, %36 : vector<16x32xf32>
    %38 = vector.broadcast %17 : vector<1x32xf32> to vector<16x32xf32>
    %39 = arith.addf %37, %38 : vector<16x32xf32>
    %c0_20 = arith.constant 0 : index
    %c0_21 = arith.constant 0 : index
    %40 = vector.load %arg8[%c0_20, %c0_21] : memref<16x32xf32, #tpu.memory_space<vmem>>, vector<16x32xf32>
    tpu.vector_store %arg8[%c0_20, %c0_21], %39 {strides = array<i32>} : memref<16x32xf32, #tpu.memory_space<vmem>>, vector<16x32xf32>,
    return
  }
  func.func @transform_0(%arg0: i32) -> (i32, i32) {
    %c0_i32 = arith.constant 0 : i32
    %c0_i32_0 = arith.constant 0 : i32
    return %arg0, %c0_i32 : i32, i32
  }
  func.func @transform_1(%arg0: i32) -> (i32, i32) {
    %c0_i32 = arith.constant 0 : i32
    %c0_i32_0 = arith.constant 0 : i32
    %c0_i32_1 = arith.constant 0 : i32
    return %c0_i32, %c0_i32_0 : i32, i32
  }
  func.func @transform_2(%arg0: i32) -> (i32, i32) {
    %c0_i32 = arith.constant 0 : i32
    %c0_i32_0 = arith.constant 0 : i32
    %c0_i32_1 = arith.constant 0 : i32
    return %c0_i32, %c0_i32_0 : i32, i32
  }
  func.func @transform_3(%arg0: i32) -> (i32, i32) {
    %c0_i32 = arith.constant 0 : i32
    %c0_i32_0 = arith.constant 0 : i32
    %c0_i32_1 = arith.constant 0 : i32
    return %c0_i32, %c0_i32_0 : i32, i32
  }
  func.func @transform_4(%arg0: i32) -> (i32, i32) {
    %c0_i32 = arith.constant 0 : i32
    %c0_i32_0 = arith.constant 0 : i32
    %c0_i32_1 = arith.constant 0 : i32
    return %c0_i32, %c0_i32_0 : i32, i32
  }
  func.func @transform_5(%arg0: i32) -> (i32, i32) {
    %c0_i32 = arith.constant 0 : i32
    %c0_i32_0 = arith.constant 0 : i32
    %c0_i32_1 = arith.constant 0 : i32
    return %c0_i32, %c0_i32_0 : i32, i32
  }
  func.func @transform_6(%arg0: i32) -> (i32, i32) {
    %c0_i32 = arith.constant 0 : i32
    %c0_i32_0 = arith.constant 0 : i32
    %c0_i32_1 = arith.constant 0 : i32
    return %c0_i32, %c0_i32_0 : i32, i32
  }
  func.func @transform_7(%arg0: i32) -> (i32, i32) {
    %c0_i32 = arith.constant 0 : i32
    %c0_i32_0 = arith.constant 0 : i32
    return %arg0, %c0_i32 : i32, i32
  }
}

module attributes {stable_mosaic.version = 11 : i64} {
  func.func @_self_attn_ln_kernel(%arg0: i32, %arg1: memref<1x8x32xf32, #tpu.memory_space<vmem>>, %arg2: memref<32x96xbf16, #tpu.memory_space<vmem>>, %arg3: memref<32x32xbf16, #tpu.memory_space<vmem>>, %arg4: memref<1x32xf32, #tpu.memory_space<vmem>>, %arg5: memref<1x32xf32, #tpu.memory_space<vmem>>, %arg6: memref<1x32xf32, #tpu.memory_space<vmem>>, %arg7: memref<1x8x32xf32, #tpu.memory_space<vmem>>) attributes {dimension_semantics = [#tpu.dimension_semantics<parallel>], iteration_bounds = array<i64: 2>, scalar_prefetch = 0 : i64, scratch_operands = 0 : i64, tpu.core_type = #tpu.core_type<tc>, window_params = [{transform_indices = @transform_0, window_bounds = array<i64: 1, 8, 32>}, {pipeline_mode = #tpu.pipeline_mode<synchronous>, transform_indices = @transform_1, window_bounds = array<i64: 32, 96>}, {pipeline_mode = #tpu.pipeline_mode<synchronous>, transform_indices = @transform_2, window_bounds = array<i64: 32, 32>}, {pipeline_mode = #tpu.pipeline_mode<synchronous>, transform_indices = @transform_3, window_bounds = array<i64: 1, 32>}, {pipeline_mode = #tpu.pipeline_mode<synchronous>, transform_indices = @transform_4, window_bounds = array<i64: 1, 32>}, {pipeline_mode = #tpu.pipeline_mode<synchronous>, transform_indices = @transform_5, window_bounds = array<i64: 1, 32>}, {transform_indices = @transform_6, window_bounds = array<i64: 1, 8, 32>}]} {
    %c0 = arith.constant 0 : index
    %c0_0 = arith.constant 0 : index
    %c0_1 = arith.constant 0 : index
    %0 = vector.load %arg1[%c0, %c0_0, %c0_1] : memref<1x8x32xf32, #tpu.memory_space<vmem>>, vector<1x8x32xf32>
    %1 = vector.shape_cast %0 : vector<1x8x32xf32> to vector<8x32xf32>
    %2 = arith.truncf %1 : vector<8x32xf32> to vector<8x32xbf16>
    %c0_2 = arith.constant 0 : index
    %c0_3 = arith.constant 0 : index
    %3 = vector.load %arg2[%c0_2, %c0_3] : memref<32x96xbf16, #tpu.memory_space<vmem>>, vector<32x96xbf16>
    %cst = arith.constant dense<0.000000e+00> : vector<8x96xf32>
    %4 = tpu.matmul %2, %3, %cst {dimension_numbers = #tpu.dot_dimension_numbers<[1], [0], [0], [1], [0, 0, 1, 1], [], []>} : vector<8x32xbf16>, vector<32x96xbf16>, vector<8x96xf32> -> vector<8x96xf32>
    %5 = vector.extract_strided_slice %4 {offsets = [0, 0], sizes = [8, 32], strides = [1, 1]} : vector<8x96xf32> to vector<8x32xf32>
    %cst_4 = arith.constant 0.353553385 : f32
    %6 = vector.broadcast %cst_4 : f32 to vector<8x32xf32>
    %7 = arith.mulf %5, %6 : vector<8x32xf32>
    %8 = vector.extract_strided_slice %4 {offsets = [0, 32], sizes = [8, 32], strides = [1, 1]} : vector<8x96xf32> to vector<8x32xf32>
    %9 = vector.extract_strided_slice %4 {offsets = [0, 64], sizes = [8, 32], strides = [1, 1]} : vector<8x96xf32> to vector<8x32xf32>
    %10 = vector.extract_strided_slice %7 {offsets = [0, 0], sizes = [8, 8], strides = [1, 1]} : vector<8x32xf32> to vector<8x8xf32>
    %11 = arith.truncf %10 : vector<8x8xf32> to vector<8x8xbf16>
    %12 = vector.extract_strided_slice %8 {offsets = [0, 0], sizes = [8, 8], strides = [1, 1]} : vector<8x32xf32> to vector<8x8xf32>
    %13 = arith.truncf %12 : vector<8x8xf32> to vector<8x8xbf16>
    %14 = vector.extract_strided_slice %9 {offsets = [0, 0], sizes = [8, 8], strides = [1, 1]} : vector<8x32xf32> to vector<8x8xf32>
    %15 = arith.truncf %14 : vector<8x8xf32> to vector<8x8xbf16>
    %cst_5 = arith.constant dense<0.000000e+00> : vector<8x8xf32>
    %16 = tpu.matmul %11, %13, %cst_5 {dimension_numbers = #tpu.dot_dimension_numbers<[1], [1], [0], [0], [0, 0, 1, 0], [], []>} : vector<8x8xbf16>, vector<8x8xbf16>, vector<8x8xf32> -> vector<8x8xf32>
    %cst_6 = arith.constant dense<0xFF800000> : vector<8xf32>
    %17 = vector.multi_reduction <maximumf>, %16, %cst_6 [1] : vector<8x8xf32> to vector<8xf32>
    %18 = vector.shape_cast %17 : vector<8xf32> to vector<8x1xf32>
    %19 = vector.broadcast %18 : vector<8x1xf32> to vector<8x8xf32>
    %20 = arith.subf %16, %19 : vector<8x8xf32>
    %21 = math.exp %20 : vector<8x8xf32>
    %cst_7 = arith.constant dense<0.000000e+00> : vector<8xf32>
    %22 = vector.multi_reduction <add>, %21, %cst_7 [1] : vector<8x8xf32> to vector<8xf32>
    %23 = vector.shape_cast %22 : vector<8xf32> to vector<8x1xf32>
    %24 = tpu.reciprocal %23 {approx = true} : vector<8x1xf32> -> vector<8x1xf32>
    %25 = vector.broadcast %24 : vector<8x1xf32> to vector<8x8xf32>
    %26 = arith.mulf %21, %25 : vector<8x8xf32>
    %27 = arith.truncf %26 : vector<8x8xf32> to vector<8x8xbf16>
    %cst_8 = arith.constant dense<0.000000e+00> : vector<8x8xf32>
    %28 = tpu.matmul %27, %15, %cst_8 {dimension_numbers = #tpu.dot_dimension_numbers<[1], [0], [0], [1], [0, 0, 1, 1], [], []>} : vector<8x8xbf16>, vector<8x8xbf16>, vector<8x8xf32> -> vector<8x8xf32>
    %29 = vector.extract_strided_slice %7 {offsets = [0, 8], sizes = [8, 8], strides = [1, 1]} : vector<8x32xf32> to vector<8x8xf32>
    %30 = arith.truncf %29 : vector<8x8xf32> to vector<8x8xbf16>
    %31 = vector.extract_strided_slice %8 {offsets = [0, 8], sizes = [8, 8], strides = [1, 1]} : vector<8x32xf32> to vector<8x8xf32>
    %32 = arith.truncf %31 : vector<8x8xf32> to vector<8x8xbf16>
    %33 = vector.extract_strided_slice %9 {offsets = [0, 8], sizes = [8, 8], strides = [1, 1]} : vector<8x32xf32> to vector<8x8xf32>
    %34 = arith.truncf %33 : vector<8x8xf32> to vector<8x8xbf16>
    %cst_9 = arith.constant dense<0.000000e+00> : vector<8x8xf32>
    %35 = tpu.matmul %30, %32, %cst_9 {dimension_numbers = #tpu.dot_dimension_numbers<[1], [1], [0], [0], [0, 0, 1, 0], [], []>} : vector<8x8xbf16>, vector<8x8xbf16>, vector<8x8xf32> -> vector<8x8xf32>
    %cst_10 = arith.constant dense<0xFF800000> : vector<8xf32>
    %36 = vector.multi_reduction <maximumf>, %35, %cst_10 [1] : vector<8x8xf32> to vector<8xf32>
    %37 = vector.shape_cast %36 : vector<8xf32> to vector<8x1xf32>
    %38 = vector.broadcast %37 : vector<8x1xf32> to vector<8x8xf32>
    %39 = arith.subf %35, %38 : vector<8x8xf32>
    %40 = math.exp %39 : vector<8x8xf32>
    %cst_11 = arith.constant dense<0.000000e+00> : vector<8xf32>
    %41 = vector.multi_reduction <add>, %40, %cst_11 [1] : vector<8x8xf32> to vector<8xf32>
    %42 = vector.shape_cast %41 : vector<8xf32> to vector<8x1xf32>
    %43 = tpu.reciprocal %42 {approx = true} : vector<8x1xf32> -> vector<8x1xf32>
    %44 = vector.broadcast %43 : vector<8x1xf32> to vector<8x8xf32>
    %45 = arith.mulf %40, %44 : vector<8x8xf32>
    %46 = arith.truncf %45 : vector<8x8xf32> to vector<8x8xbf16>
    %cst_12 = arith.constant dense<0.000000e+00> : vector<8x8xf32>
    %47 = tpu.matmul %46, %34, %cst_12 {dimension_numbers = #tpu.dot_dimension_numbers<[1], [0], [0], [1], [0, 0, 1, 1], [], []>} : vector<8x8xbf16>, vector<8x8xbf16>, vector<8x8xf32> -> vector<8x8xf32>
    %48 = vector.extract_strided_slice %7 {offsets = [0, 16], sizes = [8, 8], strides = [1, 1]} : vector<8x32xf32> to vector<8x8xf32>
    %49 = arith.truncf %48 : vector<8x8xf32> to vector<8x8xbf16>
    %50 = vector.extract_strided_slice %8 {offsets = [0, 16], sizes = [8, 8], strides = [1, 1]} : vector<8x32xf32> to vector<8x8xf32>
    %51 = arith.truncf %50 : vector<8x8xf32> to vector<8x8xbf16>
    %52 = vector.extract_strided_slice %9 {offsets = [0, 16], sizes = [8, 8], strides = [1, 1]} : vector<8x32xf32> to vector<8x8xf32>
    %53 = arith.truncf %52 : vector<8x8xf32> to vector<8x8xbf16>
    %cst_13 = arith.constant dense<0.000000e+00> : vector<8x8xf32>
    %54 = tpu.matmul %49, %51, %cst_13 {dimension_numbers = #tpu.dot_dimension_numbers<[1], [1], [0], [0], [0, 0, 1, 0], [], []>} : vector<8x8xbf16>, vector<8x8xbf16>, vector<8x8xf32> -> vector<8x8xf32>
    %cst_14 = arith.constant dense<0xFF800000> : vector<8xf32>
    %55 = vector.multi_reduction <maximumf>, %54, %cst_14 [1] : vector<8x8xf32> to vector<8xf32>
    %56 = vector.shape_cast %55 : vector<8xf32> to vector<8x1xf32>
    %57 = vector.broadcast %56 : vector<8x1xf32> to vector<8x8xf32>
    %58 = arith.subf %54, %57 : vector<8x8xf32>
    %59 = math.exp %58 : vector<8x8xf32>
    %cst_15 = arith.constant dense<0.000000e+00> : vector<8xf32>
    %60 = vector.multi_reduction <add>, %59, %cst_15 [1] : vector<8x8xf32> to vector<8xf32>
    %61 = vector.shape_cast %60 : vector<8xf32> to vector<8x1xf32>
    %62 = tpu.reciprocal %61 {approx = true} : vector<8x1xf32> -> vector<8x1xf32>
    %63 = vector.broadcast %62 : vector<8x1xf32> to vector<8x8xf32>
    %64 = arith.mulf %59, %63 : vector<8x8xf32>
    %65 = arith.truncf %64 : vector<8x8xf32> to vector<8x8xbf16>
    %cst_16 = arith.constant dense<0.000000e+00> : vector<8x8xf32>
    %66 = tpu.matmul %65, %53, %cst_16 {dimension_numbers = #tpu.dot_dimension_numbers<[1], [0], [0], [1], [0, 0, 1, 1], [], []>} : vector<8x8xbf16>, vector<8x8xbf16>, vector<8x8xf32> -> vector<8x8xf32>
    %67 = vector.extract_strided_slice %7 {offsets = [0, 24], sizes = [8, 8], strides = [1, 1]} : vector<8x32xf32> to vector<8x8xf32>
    %68 = arith.truncf %67 : vector<8x8xf32> to vector<8x8xbf16>
    %69 = vector.extract_strided_slice %8 {offsets = [0, 24], sizes = [8, 8], strides = [1, 1]} : vector<8x32xf32> to vector<8x8xf32>
    %70 = arith.truncf %69 : vector<8x8xf32> to vector<8x8xbf16>
    %71 = vector.extract_strided_slice %9 {offsets = [0, 24], sizes = [8, 8], strides = [1, 1]} : vector<8x32xf32> to vector<8x8xf32>
    %72 = arith.truncf %71 : vector<8x8xf32> to vector<8x8xbf16>
    %cst_17 = arith.constant dense<0.000000e+00> : vector<8x8xf32>
    %73 = tpu.matmul %68, %70, %cst_17 {dimension_numbers = #tpu.dot_dimension_numbers<[1], [1], [0], [0], [0, 0, 1, 0], [], []>} : vector<8x8xbf16>, vector<8x8xbf16>, vector<8x8xf32> -> vector<8x8xf32>
    %cst_18 = arith.constant dense<0xFF800000> : vector<8xf32>
    %74 = vector.multi_reduction <maximumf>, %73, %cst_18 [1] : vector<8x8xf32> to vector<8xf32>
    %75 = vector.shape_cast %74 : vector<8xf32> to vector<8x1xf32>
    %76 = vector.broadcast %75 : vector<8x1xf32> to vector<8x8xf32>
    %77 = arith.subf %73, %76 : vector<8x8xf32>
    %78 = math.exp %77 : vector<8x8xf32>
    %cst_19 = arith.constant dense<0.000000e+00> : vector<8xf32>
    %79 = vector.multi_reduction <add>, %78, %cst_19 [1] : vector<8x8xf32> to vector<8xf32>
    %80 = vector.shape_cast %79 : vector<8xf32> to vector<8x1xf32>
    %81 = tpu.reciprocal %80 {approx = true} : vector<8x1xf32> -> vector<8x1xf32>
    %82 = vector.broadcast %81 : vector<8x1xf32> to vector<8x8xf32>
    %83 = arith.mulf %78, %82 : vector<8x8xf32>
    %84 = arith.truncf %83 : vector<8x8xf32> to vector<8x8xbf16>
    %cst_20 = arith.constant dense<0.000000e+00> : vector<8x8xf32>
    %85 = tpu.matmul %84, %72, %cst_20 {dimension_numbers = #tpu.dot_dimension_numbers<[1], [0], [0], [1], [0, 0, 1, 1], [], []>} : vector<8x8xbf16>, vector<8x8xbf16>, vector<8x8xf32> -> vector<8x8xf32>
    %86 = tpu.concatenate %28, %47, %66, %85 in 1 : vector<8x8xf32>, vector<8x8xf32>, vector<8x8xf32>, vector<8x8xf32> -> vector<8x32xf32>
    %87 = arith.truncf %86 : vector<8x32xf32> to vector<8x32xbf16>
    %c0_21 = arith.constant 0 : index
    %c0_22 = arith.constant 0 : index
    %88 = vector.load %arg3[%c0_21, %c0_22] : memref<32x32xbf16, #tpu.memory_space<vmem>>, vector<32x32xbf16>
    %cst_23 = arith.constant dense<0.000000e+00> : vector<8x32xf32>
    %89 = tpu.matmul %87, %88, %cst_23 {dimension_numbers = #tpu.dot_dimension_numbers<[1], [0], [0], [1], [0, 0, 1, 1], [], []>} : vector<8x32xbf16>, vector<32x32xbf16>, vector<8x32xf32> -> vector<8x32xf32>
    %c0_24 = arith.constant 0 : index
    %c0_25 = arith.constant 0 : index
    %90 = vector.load %arg4[%c0_24, %c0_25] : memref<1x32xf32, #tpu.memory_space<vmem>>, vector<1x32xf32>
    %91 = vector.broadcast %90 : vector<1x32xf32> to vector<8x32xf32>
    %92 = arith.addf %89, %91 : vector<8x32xf32>
    %93 = arith.addf %92, %1 : vector<8x32xf32>
    %c0_26 = arith.constant 0 : index
    %c0_27 = arith.constant 0 : index
    %94 = vector.load %arg5[%c0_26, %c0_27] : memref<1x32xf32, #tpu.memory_space<vmem>>, vector<1x32xf32>
    %c0_28 = arith.constant 0 : index
    %c0_29 = arith.constant 0 : index
    %95 = vector.load %arg6[%c0_28, %c0_29] : memref<1x32xf32, #tpu.memory_space<vmem>>, vector<1x32xf32>
    %cst_30 = arith.constant dense<0.000000e+00> : vector<8xf32>
    %96 = vector.multi_reduction <add>, %93, %cst_30 [1] : vector<8x32xf32> to vector<8xf32>
    %97 = vector.shape_cast %96 : vector<8xf32> to vector<8x1xf32>
    %cst_31 = arith.constant 3.200000e+01 : f32
    %98 = vector.broadcast %cst_31 : f32 to vector<8x1xf32>
    %99 = arith.divf %97, %98 : vector<8x1xf32>
    %100 = vector.broadcast %99 : vector<8x1xf32> to vector<8x32xf32>
    %101 = arith.subf %93, %100 : vector<8x32xf32>
    %102 = arith.mulf %101, %101 : vector<8x32xf32>
    %cst_32 = arith.constant dense<0.000000e+00> : vector<8xf32>
    %103 = vector.multi_reduction <add>, %102, %cst_32 [1] : vector<8x32xf32> to vector<8xf32>
    %104 = vector.shape_cast %103 : vector<8xf32> to vector<8x1xf32>
    %cst_33 = arith.constant 3.200000e+01 : f32
    %105 = vector.broadcast %cst_33 : f32 to vector<8x1xf32>
    %106 = arith.divf %104, %105 : vector<8x1xf32>
    %107 = vector.broadcast %99 : vector<8x1xf32> to vector<8x32xf32>
    %108 = arith.subf %93, %107 : vector<8x32xf32>
    %cst_34 = arith.constant 9.99999974E-6 : f32
    %109 = vector.broadcast %cst_34 : f32 to vector<8x1xf32>
    %110 = arith.addf %106, %109 : vector<8x1xf32>
    %111 = math.rsqrt %110 : vector<8x1xf32>
    %112 = vector.broadcast %111 : vector<8x1xf32> to vector<8x32xf32>
    %113 = arith.mulf %108, %112 : vector<8x32xf32>
    %114 = vector.broadcast %94 : vector<1x32xf32> to vector<8x32xf32>
    %115 = arith.mulf %113, %114 : vector<8x32xf32>
    %116 = vector.broadcast %95 : vector<1x32xf32> to vector<8x32xf32>
    %117 = arith.addf %115, %116 : vector<8x32xf32>
    %c0_35 = arith.constant 0 : index
    %c0_36 = arith.constant 0 : index
    %c0_37 = arith.constant 0 : index
    %118 = vector.load %arg7[%c0_35, %c0_36, %c0_37] : memref<1x8x32xf32, #tpu.memory_space<vmem>>, vector<1x8x32xf32>
    %119 = vector.shape_cast %118 : vector<1x8x32xf32> to vector<8x32xf32>
    %120 = vector.shape_cast %117 : vector<8x32xf32> to vector<1x8x32xf32>
    tpu.vector_store %arg7[%c0_35, %c0_36, %c0_37], %120 {strides = array<i32>} : memref<1x8x32xf32, #tpu.memory_space<vmem>>, vector<1x8x32xf32>,
    return
  }
  func.func @transform_0(%arg0: i32) -> (i32, i32, i32) {
    %c0_i32 = arith.constant 0 : i32
    %c0_i32_0 = arith.constant 0 : i32
    %c0_i32_1 = arith.constant 0 : i32
    return %arg0, %c0_i32, %c0_i32_0 : i32, i32, i32
  }
  func.func @transform_1(%arg0: i32) -> (i32, i32) {
    %c0_i32 = arith.constant 0 : i32
    %c0_i32_0 = arith.constant 0 : i32
    %c0_i32_1 = arith.constant 0 : i32
    return %c0_i32, %c0_i32_0 : i32, i32
  }
  func.func @transform_2(%arg0: i32) -> (i32, i32) {
    %c0_i32 = arith.constant 0 : i32
    %c0_i32_0 = arith.constant 0 : i32
    %c0_i32_1 = arith.constant 0 : i32
    return %c0_i32, %c0_i32_0 : i32, i32
  }
  func.func @transform_3(%arg0: i32) -> (i32, i32) {
    %c0_i32 = arith.constant 0 : i32
    %c0_i32_0 = arith.constant 0 : i32
    %c0_i32_1 = arith.constant 0 : i32
    return %c0_i32, %c0_i32_0 : i32, i32
  }
  func.func @transform_4(%arg0: i32) -> (i32, i32) {
    %c0_i32 = arith.constant 0 : i32
    %c0_i32_0 = arith.constant 0 : i32
    %c0_i32_1 = arith.constant 0 : i32
    return %c0_i32, %c0_i32_0 : i32, i32
  }
  func.func @transform_5(%arg0: i32) -> (i32, i32) {
    %c0_i32 = arith.constant 0 : i32
    %c0_i32_0 = arith.constant 0 : i32
    %c0_i32_1 = arith.constant 0 : i32
    return %c0_i32, %c0_i32_0 : i32, i32
  }
  func.func @transform_6(%arg0: i32) -> (i32, i32, i32) {
    %c0_i32 = arith.constant 0 : i32
    %c0_i32_0 = arith.constant 0 : i32
    %c0_i32_1 = arith.constant 0 : i32
    return %arg0, %c0_i32, %c0_i32_0 : i32, i32, i32
  }
}

module attributes {stable_mosaic.version = 11 : i64} {
  func.func @_self_attn_ln_kernel(%arg0: i32, %arg1: memref<1x8x32xf32, #tpu.memory_space<vmem>>, %arg2: memref<32x96xbf16, #tpu.memory_space<vmem>>, %arg3: memref<32x32xbf16, #tpu.memory_space<vmem>>, %arg4: memref<1x32xf32, #tpu.memory_space<vmem>>, %arg5: memref<1x32xf32, #tpu.memory_space<vmem>>, %arg6: memref<1x32xf32, #tpu.memory_space<vmem>>, %arg7: memref<8x8xf32, #tpu.memory_space<vmem>>, %arg8: memref<1x8x32xf32, #tpu.memory_space<vmem>>) attributes {dimension_semantics = [#tpu.dimension_semantics<parallel>], iteration_bounds = array<i64: 2>, scalar_prefetch = 0 : i64, scratch_operands = 0 : i64, tpu.core_type = #tpu.core_type<tc>, window_params = [{transform_indices = @transform_0, window_bounds = array<i64: 1, 8, 32>}, {pipeline_mode = #tpu.pipeline_mode<synchronous>, transform_indices = @transform_1, window_bounds = array<i64: 32, 96>}, {pipeline_mode = #tpu.pipeline_mode<synchronous>, transform_indices = @transform_2, window_bounds = array<i64: 32, 32>}, {pipeline_mode = #tpu.pipeline_mode<synchronous>, transform_indices = @transform_3, window_bounds = array<i64: 1, 32>}, {pipeline_mode = #tpu.pipeline_mode<synchronous>, transform_indices = @transform_4, window_bounds = array<i64: 1, 32>}, {pipeline_mode = #tpu.pipeline_mode<synchronous>, transform_indices = @transform_5, window_bounds = array<i64: 1, 32>}, {pipeline_mode = #tpu.pipeline_mode<synchronous>, transform_indices = @transform_6, window_bounds = array<i64: 8, 8>}, {transform_indices = @transform_7, window_bounds = array<i64: 1, 8, 32>}]} {
    %c0 = arith.constant 0 : index
    %c0_0 = arith.constant 0 : index
    %0 = vector.load %arg7[%c0, %c0_0] : memref<8x8xf32, #tpu.memory_space<vmem>>, vector<8x8xf32>
    %c0_1 = arith.constant 0 : index
    %c0_2 = arith.constant 0 : index
    %c0_3 = arith.constant 0 : index
    %1 = vector.load %arg1[%c0_1, %c0_2, %c0_3] : memref<1x8x32xf32, #tpu.memory_space<vmem>>, vector<1x8x32xf32>
    %2 = vector.shape_cast %1 : vector<1x8x32xf32> to vector<8x32xf32>
    %3 = arith.truncf %2 : vector<8x32xf32> to vector<8x32xbf16>
    %c0_4 = arith.constant 0 : index
    %c0_5 = arith.constant 0 : index
    %4 = vector.load %arg2[%c0_4, %c0_5] : memref<32x96xbf16, #tpu.memory_space<vmem>>, vector<32x96xbf16>
    %cst = arith.constant dense<0.000000e+00> : vector<8x96xf32>
    %5 = tpu.matmul %3, %4, %cst {dimension_numbers = #tpu.dot_dimension_numbers<[1], [0], [0], [1], [0, 0, 1, 1], [], []>} : vector<8x32xbf16>, vector<32x96xbf16>, vector<8x96xf32> -> vector<8x96xf32>
    %6 = vector.extract_strided_slice %5 {offsets = [0, 0], sizes = [8, 32], strides = [1, 1]} : vector<8x96xf32> to vector<8x32xf32>
    %cst_6 = arith.constant 0.353553385 : f32
    %7 = vector.broadcast %cst_6 : f32 to vector<8x32xf32>
    %8 = arith.mulf %6, %7 : vector<8x32xf32>
    %9 = vector.extract_strided_slice %5 {offsets = [0, 32], sizes = [8, 32], strides = [1, 1]} : vector<8x96xf32> to vector<8x32xf32>
    %10 = vector.extract_strided_slice %5 {offsets = [0, 64], sizes = [8, 32], strides = [1, 1]} : vector<8x96xf32> to vector<8x32xf32>
    %11 = vector.extract_strided_slice %8 {offsets = [0, 0], sizes = [8, 8], strides = [1, 1]} : vector<8x32xf32> to vector<8x8xf32>
    %12 = arith.truncf %11 : vector<8x8xf32> to vector<8x8xbf16>
    %13 = vector.extract_strided_slice %9 {offsets = [0, 0], sizes = [8, 8], strides = [1, 1]} : vector<8x32xf32> to vector<8x8xf32>
    %14 = arith.truncf %13 : vector<8x8xf32> to vector<8x8xbf16>
    %15 = vector.extract_strided_slice %10 {offsets = [0, 0], sizes = [8, 8], strides = [1, 1]} : vector<8x32xf32> to vector<8x8xf32>
    %16 = arith.truncf %15 : vector<8x8xf32> to vector<8x8xbf16>
    %cst_7 = arith.constant dense<0.000000e+00> : vector<8x8xf32>
    %17 = tpu.matmul %12, %14, %cst_7 {dimension_numbers = #tpu.dot_dimension_numbers<[1], [1], [0], [0], [0, 0, 1, 0], [], []>} : vector<8x8xbf16>, vector<8x8xbf16>, vector<8x8xf32> -> vector<8x8xf32>
    %cst_8 = arith.constant 0.000000e+00 : f32
    %18 = vector.broadcast %cst_8 : f32 to vector<8x8xf32>
    %19 = arith.cmpf oeq, %0, %18 : vector<8x8xf32>
    %cst_9 = arith.constant -1.000000e+20 : f32
    %20 = vector.broadcast %cst_9 : f32 to vector<8x8xf32>
    %21 = arith.select %19, %20, %17 : vector<8x8xi1>, vector<8x8xf32>
    %cst_10 = arith.constant dense<0xFF800000> : vector<8xf32>
    %22 = vector.multi_reduction <maximumf>, %21, %cst_10 [1] : vector<8x8xf32> to vector<8xf32>
    %23 = vector.shape_cast %22 : vector<8xf32> to vector<8x1xf32>
    %24 = vector.broadcast %23 : vector<8x1xf32> to vector<8x8xf32>
    %25 = arith.subf %21, %24 : vector<8x8xf32>
    %26 = math.exp %25 : vector<8x8xf32>
    %cst_11 = arith.constant dense<0.000000e+00> : vector<8xf32>
    %27 = vector.multi_reduction <add>, %26, %cst_11 [1] : vector<8x8xf32> to vector<8xf32>
    %28 = vector.shape_cast %27 : vector<8xf32> to vector<8x1xf32>
    %29 = tpu.reciprocal %28 {approx = true} : vector<8x1xf32> -> vector<8x1xf32>
    %30 = vector.broadcast %29 : vector<8x1xf32> to vector<8x8xf32>
    %31 = arith.mulf %26, %30 : vector<8x8xf32>
    %32 = arith.truncf %31 : vector<8x8xf32> to vector<8x8xbf16>
    %cst_12 = arith.constant dense<0.000000e+00> : vector<8x8xf32>
    %33 = tpu.matmul %32, %16, %cst_12 {dimension_numbers = #tpu.dot_dimension_numbers<[1], [0], [0], [1], [0, 0, 1, 1], [], []>} : vector<8x8xbf16>, vector<8x8xbf16>, vector<8x8xf32> -> vector<8x8xf32>
    %34 = vector.extract_strided_slice %8 {offsets = [0, 8], sizes = [8, 8], strides = [1, 1]} : vector<8x32xf32> to vector<8x8xf32>
    %35 = arith.truncf %34 : vector<8x8xf32> to vector<8x8xbf16>
    %36 = vector.extract_strided_slice %9 {offsets = [0, 8], sizes = [8, 8], strides = [1, 1]} : vector<8x32xf32> to vector<8x8xf32>
    %37 = arith.truncf %36 : vector<8x8xf32> to vector<8x8xbf16>
    %38 = vector.extract_strided_slice %10 {offsets = [0, 8], sizes = [8, 8], strides = [1, 1]} : vector<8x32xf32> to vector<8x8xf32>
    %39 = arith.truncf %38 : vector<8x8xf32> to vector<8x8xbf16>
    %cst_13 = arith.constant dense<0.000000e+00> : vector<8x8xf32>
    %40 = tpu.matmul %35, %37, %cst_13 {dimension_numbers = #tpu.dot_dimension_numbers<[1], [1], [0], [0], [0, 0, 1, 0], [], []>} : vector<8x8xbf16>, vector<8x8xbf16>, vector<8x8xf32> -> vector<8x8xf32>
    %cst_14 = arith.constant 0.000000e+00 : f32
    %41 = vector.broadcast %cst_14 : f32 to vector<8x8xf32>
    %42 = arith.cmpf oeq, %0, %41 : vector<8x8xf32>
    %cst_15 = arith.constant -1.000000e+20 : f32
    %43 = vector.broadcast %cst_15 : f32 to vector<8x8xf32>
    %44 = arith.select %42, %43, %40 : vector<8x8xi1>, vector<8x8xf32>
    %cst_16 = arith.constant dense<0xFF800000> : vector<8xf32>
    %45 = vector.multi_reduction <maximumf>, %44, %cst_16 [1] : vector<8x8xf32> to vector<8xf32>
    %46 = vector.shape_cast %45 : vector<8xf32> to vector<8x1xf32>
    %47 = vector.broadcast %46 : vector<8x1xf32> to vector<8x8xf32>
    %48 = arith.subf %44, %47 : vector<8x8xf32>
    %49 = math.exp %48 : vector<8x8xf32>
    %cst_17 = arith.constant dense<0.000000e+00> : vector<8xf32>
    %50 = vector.multi_reduction <add>, %49, %cst_17 [1] : vector<8x8xf32> to vector<8xf32>
    %51 = vector.shape_cast %50 : vector<8xf32> to vector<8x1xf32>
    %52 = tpu.reciprocal %51 {approx = true} : vector<8x1xf32> -> vector<8x1xf32>
    %53 = vector.broadcast %52 : vector<8x1xf32> to vector<8x8xf32>
    %54 = arith.mulf %49, %53 : vector<8x8xf32>
    %55 = arith.truncf %54 : vector<8x8xf32> to vector<8x8xbf16>
    %cst_18 = arith.constant dense<0.000000e+00> : vector<8x8xf32>
    %56 = tpu.matmul %55, %39, %cst_18 {dimension_numbers = #tpu.dot_dimension_numbers<[1], [0], [0], [1], [0, 0, 1, 1], [], []>} : vector<8x8xbf16>, vector<8x8xbf16>, vector<8x8xf32> -> vector<8x8xf32>
    %57 = vector.extract_strided_slice %8 {offsets = [0, 16], sizes = [8, 8], strides = [1, 1]} : vector<8x32xf32> to vector<8x8xf32>
    %58 = arith.truncf %57 : vector<8x8xf32> to vector<8x8xbf16>
    %59 = vector.extract_strided_slice %9 {offsets = [0, 16], sizes = [8, 8], strides = [1, 1]} : vector<8x32xf32> to vector<8x8xf32>
    %60 = arith.truncf %59 : vector<8x8xf32> to vector<8x8xbf16>
    %61 = vector.extract_strided_slice %10 {offsets = [0, 16], sizes = [8, 8], strides = [1, 1]} : vector<8x32xf32> to vector<8x8xf32>
    %62 = arith.truncf %61 : vector<8x8xf32> to vector<8x8xbf16>
    %cst_19 = arith.constant dense<0.000000e+00> : vector<8x8xf32>
    %63 = tpu.matmul %58, %60, %cst_19 {dimension_numbers = #tpu.dot_dimension_numbers<[1], [1], [0], [0], [0, 0, 1, 0], [], []>} : vector<8x8xbf16>, vector<8x8xbf16>, vector<8x8xf32> -> vector<8x8xf32>
    %cst_20 = arith.constant 0.000000e+00 : f32
    %64 = vector.broadcast %cst_20 : f32 to vector<8x8xf32>
    %65 = arith.cmpf oeq, %0, %64 : vector<8x8xf32>
    %cst_21 = arith.constant -1.000000e+20 : f32
    %66 = vector.broadcast %cst_21 : f32 to vector<8x8xf32>
    %67 = arith.select %65, %66, %63 : vector<8x8xi1>, vector<8x8xf32>
    %cst_22 = arith.constant dense<0xFF800000> : vector<8xf32>
    %68 = vector.multi_reduction <maximumf>, %67, %cst_22 [1] : vector<8x8xf32> to vector<8xf32>
    %69 = vector.shape_cast %68 : vector<8xf32> to vector<8x1xf32>
    %70 = vector.broadcast %69 : vector<8x1xf32> to vector<8x8xf32>
    %71 = arith.subf %67, %70 : vector<8x8xf32>
    %72 = math.exp %71 : vector<8x8xf32>
    %cst_23 = arith.constant dense<0.000000e+00> : vector<8xf32>
    %73 = vector.multi_reduction <add>, %72, %cst_23 [1] : vector<8x8xf32> to vector<8xf32>
    %74 = vector.shape_cast %73 : vector<8xf32> to vector<8x1xf32>
    %75 = tpu.reciprocal %74 {approx = true} : vector<8x1xf32> -> vector<8x1xf32>
    %76 = vector.broadcast %75 : vector<8x1xf32> to vector<8x8xf32>
    %77 = arith.mulf %72, %76 : vector<8x8xf32>
    %78 = arith.truncf %77 : vector<8x8xf32> to vector<8x8xbf16>
    %cst_24 = arith.constant dense<0.000000e+00> : vector<8x8xf32>
    %79 = tpu.matmul %78, %62, %cst_24 {dimension_numbers = #tpu.dot_dimension_numbers<[1], [0], [0], [1], [0, 0, 1, 1], [], []>} : vector<8x8xbf16>, vector<8x8xbf16>, vector<8x8xf32> -> vector<8x8xf32>
    %80 = vector.extract_strided_slice %8 {offsets = [0, 24], sizes = [8, 8], strides = [1, 1]} : vector<8x32xf32> to vector<8x8xf32>
    %81 = arith.truncf %80 : vector<8x8xf32> to vector<8x8xbf16>
    %82 = vector.extract_strided_slice %9 {offsets = [0, 24], sizes = [8, 8], strides = [1, 1]} : vector<8x32xf32> to vector<8x8xf32>
    %83 = arith.truncf %82 : vector<8x8xf32> to vector<8x8xbf16>
    %84 = vector.extract_strided_slice %10 {offsets = [0, 24], sizes = [8, 8], strides = [1, 1]} : vector<8x32xf32> to vector<8x8xf32>
    %85 = arith.truncf %84 : vector<8x8xf32> to vector<8x8xbf16>
    %cst_25 = arith.constant dense<0.000000e+00> : vector<8x8xf32>
    %86 = tpu.matmul %81, %83, %cst_25 {dimension_numbers = #tpu.dot_dimension_numbers<[1], [1], [0], [0], [0, 0, 1, 0], [], []>} : vector<8x8xbf16>, vector<8x8xbf16>, vector<8x8xf32> -> vector<8x8xf32>
    %cst_26 = arith.constant 0.000000e+00 : f32
    %87 = vector.broadcast %cst_26 : f32 to vector<8x8xf32>
    %88 = arith.cmpf oeq, %0, %87 : vector<8x8xf32>
    %cst_27 = arith.constant -1.000000e+20 : f32
    %89 = vector.broadcast %cst_27 : f32 to vector<8x8xf32>
    %90 = arith.select %88, %89, %86 : vector<8x8xi1>, vector<8x8xf32>
    %cst_28 = arith.constant dense<0xFF800000> : vector<8xf32>
    %91 = vector.multi_reduction <maximumf>, %90, %cst_28 [1] : vector<8x8xf32> to vector<8xf32>
    %92 = vector.shape_cast %91 : vector<8xf32> to vector<8x1xf32>
    %93 = vector.broadcast %92 : vector<8x1xf32> to vector<8x8xf32>
    %94 = arith.subf %90, %93 : vector<8x8xf32>
    %95 = math.exp %94 : vector<8x8xf32>
    %cst_29 = arith.constant dense<0.000000e+00> : vector<8xf32>
    %96 = vector.multi_reduction <add>, %95, %cst_29 [1] : vector<8x8xf32> to vector<8xf32>
    %97 = vector.shape_cast %96 : vector<8xf32> to vector<8x1xf32>
    %98 = tpu.reciprocal %97 {approx = true} : vector<8x1xf32> -> vector<8x1xf32>
    %99 = vector.broadcast %98 : vector<8x1xf32> to vector<8x8xf32>
    %100 = arith.mulf %95, %99 : vector<8x8xf32>
    %101 = arith.truncf %100 : vector<8x8xf32> to vector<8x8xbf16>
    %cst_30 = arith.constant dense<0.000000e+00> : vector<8x8xf32>
    %102 = tpu.matmul %101, %85, %cst_30 {dimension_numbers = #tpu.dot_dimension_numbers<[1], [0], [0], [1], [0, 0, 1, 1], [], []>} : vector<8x8xbf16>, vector<8x8xbf16>, vector<8x8xf32> -> vector<8x8xf32>
    %103 = tpu.concatenate %33, %56, %79, %102 in 1 : vector<8x8xf32>, vector<8x8xf32>, vector<8x8xf32>, vector<8x8xf32> -> vector<8x32xf32>
    %104 = arith.truncf %103 : vector<8x32xf32> to vector<8x32xbf16>
    %c0_31 = arith.constant 0 : index
    %c0_32 = arith.constant 0 : index
    %105 = vector.load %arg3[%c0_31, %c0_32] : memref<32x32xbf16, #tpu.memory_space<vmem>>, vector<32x32xbf16>
    %cst_33 = arith.constant dense<0.000000e+00> : vector<8x32xf32>
    %106 = tpu.matmul %104, %105, %cst_33 {dimension_numbers = #tpu.dot_dimension_numbers<[1], [0], [0], [1], [0, 0, 1, 1], [], []>} : vector<8x32xbf16>, vector<32x32xbf16>, vector<8x32xf32> -> vector<8x32xf32>
    %c0_34 = arith.constant 0 : index
    %c0_35 = arith.constant 0 : index
    %107 = vector.load %arg4[%c0_34, %c0_35] : memref<1x32xf32, #tpu.memory_space<vmem>>, vector<1x32xf32>
    %108 = vector.broadcast %107 : vector<1x32xf32> to vector<8x32xf32>
    %109 = arith.addf %106, %108 : vector<8x32xf32>
    %110 = arith.addf %109, %2 : vector<8x32xf32>
    %c0_36 = arith.constant 0 : index
    %c0_37 = arith.constant 0 : index
    %111 = vector.load %arg5[%c0_36, %c0_37] : memref<1x32xf32, #tpu.memory_space<vmem>>, vector<1x32xf32>
    %c0_38 = arith.constant 0 : index
    %c0_39 = arith.constant 0 : index
    %112 = vector.load %arg6[%c0_38, %c0_39] : memref<1x32xf32, #tpu.memory_space<vmem>>, vector<1x32xf32>
    %cst_40 = arith.constant dense<0.000000e+00> : vector<8xf32>
    %113 = vector.multi_reduction <add>, %110, %cst_40 [1] : vector<8x32xf32> to vector<8xf32>
    %114 = vector.shape_cast %113 : vector<8xf32> to vector<8x1xf32>
    %cst_41 = arith.constant 3.200000e+01 : f32
    %115 = vector.broadcast %cst_41 : f32 to vector<8x1xf32>
    %116 = arith.divf %114, %115 : vector<8x1xf32>
    %117 = vector.broadcast %116 : vector<8x1xf32> to vector<8x32xf32>
    %118 = arith.subf %110, %117 : vector<8x32xf32>
    %119 = arith.mulf %118, %118 : vector<8x32xf32>
    %cst_42 = arith.constant dense<0.000000e+00> : vector<8xf32>
    %120 = vector.multi_reduction <add>, %119, %cst_42 [1] : vector<8x32xf32> to vector<8xf32>
    %121 = vector.shape_cast %120 : vector<8xf32> to vector<8x1xf32>
    %cst_43 = arith.constant 3.200000e+01 : f32
    %122 = vector.broadcast %cst_43 : f32 to vector<8x1xf32>
    %123 = arith.divf %121, %122 : vector<8x1xf32>
    %124 = vector.broadcast %116 : vector<8x1xf32> to vector<8x32xf32>
    %125 = arith.subf %110, %124 : vector<8x32xf32>
    %cst_44 = arith.constant 9.99999974E-6 : f32
    %126 = vector.broadcast %cst_44 : f32 to vector<8x1xf32>
    %127 = arith.addf %123, %126 : vector<8x1xf32>
    %128 = math.rsqrt %127 : vector<8x1xf32>
    %129 = vector.broadcast %128 : vector<8x1xf32> to vector<8x32xf32>
    %130 = arith.mulf %125, %129 : vector<8x32xf32>
    %131 = vector.broadcast %111 : vector<1x32xf32> to vector<8x32xf32>
    %132 = arith.mulf %130, %131 : vector<8x32xf32>
    %133 = vector.broadcast %112 : vector<1x32xf32> to vector<8x32xf32>
    %134 = arith.addf %132, %133 : vector<8x32xf32>
    %c0_45 = arith.constant 0 : index
    %c0_46 = arith.constant 0 : index
    %c0_47 = arith.constant 0 : index
    %135 = vector.load %arg8[%c0_45, %c0_46, %c0_47] : memref<1x8x32xf32, #tpu.memory_space<vmem>>, vector<1x8x32xf32>
    %136 = vector.shape_cast %135 : vector<1x8x32xf32> to vector<8x32xf32>
    %137 = vector.shape_cast %134 : vector<8x32xf32> to vector<1x8x32xf32>
    tpu.vector_store %arg8[%c0_45, %c0_46, %c0_47], %137 {strides = array<i32>} : memref<1x8x32xf32, #tpu.memory_space<vmem>>, vector<1x8x32xf32>,
    return
  }
  func.func @transform_0(%arg0: i32) -> (i32, i32, i32) {
    %c0_i32 = arith.constant 0 : i32
    %c0_i32_0 = arith.constant 0 : i32
    %c0_i32_1 = arith.constant 0 : i32
    return %arg0, %c0_i32, %c0_i32_0 : i32, i32, i32
  }
  func.func @transform_1(%arg0: i32) -> (i32, i32) {
    %c0_i32 = arith.constant 0 : i32
    %c0_i32_0 = arith.constant 0 : i32
    %c0_i32_1 = arith.constant 0 : i32
    return %c0_i32, %c0_i32_0 : i32, i32
  }
  func.func @transform_2(%arg0: i32) -> (i32, i32) {
    %c0_i32 = arith.constant 0 : i32
    %c0_i32_0 = arith.constant 0 : i32
    %c0_i32_1 = arith.constant 0 : i32
    return %c0_i32, %c0_i32_0 : i32, i32
  }
  func.func @transform_3(%arg0: i32) -> (i32, i32) {
    %c0_i32 = arith.constant 0 : i32
    %c0_i32_0 = arith.constant 0 : i32
    %c0_i32_1 = arith.constant 0 : i32
    return %c0_i32, %c0_i32_0 : i32, i32
  }
  func.func @transform_4(%arg0: i32) -> (i32, i32) {
    %c0_i32 = arith.constant 0 : i32
    %c0_i32_0 = arith.constant 0 : i32
    %c0_i32_1 = arith.constant 0 : i32
    return %c0_i32, %c0_i32_0 : i32, i32
  }
  func.func @transform_5(%arg0: i32) -> (i32, i32) {
    %c0_i32 = arith.constant 0 : i32
    %c0_i32_0 = arith.constant 0 : i32
    %c0_i32_1 = arith.constant 0 : i32
    return %c0_i32, %c0_i32_0 : i32, i32
  }
  func.func @transform_6(%arg0: i32) -> (i32, i32) {
    %c0_i32 = arith.constant 0 : i32
    %c0_i32_0 = arith.constant 0 : i32
    %c0_i32_1 = arith.constant 0 : i32
    return %c0_i32, %c0_i32_0 : i32, i32
  }
  func.func @transform_7(%arg0: i32) -> (i32, i32, i32) {
    %c0_i32 = arith.constant 0 : i32
    %c0_i32_0 = arith.constant 0 : i32
    %c0_i32_1 = arith.constant 0 : i32
    return %arg0, %c0_i32, %c0_i32_0 : i32, i32, i32
  }
}

module attributes {stable_mosaic.version = 11 : i64} {
  func.func @_cross_attn_ln_kernel(%arg0: i32, %arg1: memref<1x8x32xf32, #tpu.memory_space<vmem>>, %arg2: memref<1x8x32xf32, #tpu.memory_space<vmem>>, %arg3: memref<1x8x32xf32, #tpu.memory_space<vmem>>, %arg4: memref<32x32xbf16, #tpu.memory_space<vmem>>, %arg5: memref<32x32xbf16, #tpu.memory_space<vmem>>, %arg6: memref<32x32xbf16, #tpu.memory_space<vmem>>, %arg7: memref<32x32xbf16, #tpu.memory_space<vmem>>, %arg8: memref<1x32xf32, #tpu.memory_space<vmem>>, %arg9: memref<1x32xf32, #tpu.memory_space<vmem>>, %arg10: memref<1x32xf32, #tpu.memory_space<vmem>>, %arg11: memref<1x8x32xf32, #tpu.memory_space<vmem>>) attributes {dimension_semantics = [#tpu.dimension_semantics<parallel>], iteration_bounds = array<i64: 2>, scalar_prefetch = 0 : i64, scratch_operands = 0 : i64, tpu.core_type = #tpu.core_type<tc>, window_params = [{transform_indices = @transform_0, window_bounds = array<i64: 1, 8, 32>}, {transform_indices = @transform_1, window_bounds = array<i64: 1, 8, 32>}, {transform_indices = @transform_2, window_bounds = array<i64: 1, 8, 32>}, {pipeline_mode = #tpu.pipeline_mode<synchronous>, transform_indices = @transform_3, window_bounds = array<i64: 32, 32>}, {pipeline_mode = #tpu.pipeline_mode<synchronous>, transform_indices = @transform_4, window_bounds = array<i64: 32, 32>}, {pipeline_mode = #tpu.pipeline_mode<synchronous>, transform_indices = @transform_5, window_bounds = array<i64: 32, 32>}, {pipeline_mode = #tpu.pipeline_mode<synchronous>, transform_indices = @transform_6, window_bounds = array<i64: 32, 32>}, {pipeline_mode = #tpu.pipeline_mode<synchronous>, transform_indices = @transform_7, window_bounds = array<i64: 1, 32>}, {pipeline_mode = #tpu.pipeline_mode<synchronous>, transform_indices = @transform_8, window_bounds = array<i64: 1, 32>}, {pipeline_mode = #tpu.pipeline_mode<synchronous>, transform_indices = @transform_9, window_bounds = array<i64: 1, 32>}, {transform_indices = @transform_10, window_bounds = array<i64: 1, 8, 32>}]} {
    %c0 = arith.constant 0 : index
    %c0_0 = arith.constant 0 : index
    %c0_1 = arith.constant 0 : index
    %0 = vector.load %arg3[%c0, %c0_0, %c0_1] : memref<1x8x32xf32, #tpu.memory_space<vmem>>, vector<1x8x32xf32>
    %1 = vector.shape_cast %0 : vector<1x8x32xf32> to vector<8x32xf32>
    %c0_2 = arith.constant 0 : index
    %c0_3 = arith.constant 0 : index
    %c0_4 = arith.constant 0 : index
    %2 = vector.load %arg1[%c0_2, %c0_3, %c0_4] : memref<1x8x32xf32, #tpu.memory_space<vmem>>, vector<1x8x32xf32>
    %3 = vector.shape_cast %2 : vector<1x8x32xf32> to vector<8x32xf32>
    %4 = arith.truncf %3 : vector<8x32xf32> to vector<8x32xbf16>
    %c0_5 = arith.constant 0 : index
    %c0_6 = arith.constant 0 : index
    %5 = vector.load %arg4[%c0_5, %c0_6] : memref<32x32xbf16, #tpu.memory_space<vmem>>, vector<32x32xbf16>
    %cst = arith.constant dense<0.000000e+00> : vector<8x32xf32>
    %6 = tpu.matmul %4, %5, %cst {dimension_numbers = #tpu.dot_dimension_numbers<[1], [0], [0], [1], [0, 0, 1, 1], [], []>} : vector<8x32xbf16>, vector<32x32xbf16>, vector<8x32xf32> -> vector<8x32xf32>
    %cst_7 = arith.constant 0.353553385 : f32
    %7 = vector.broadcast %cst_7 : f32 to vector<8x32xf32>
    %8 = arith.mulf %6, %7 : vector<8x32xf32>
    %c0_8 = arith.constant 0 : index
    %c0_9 = arith.constant 0 : index
    %c0_10 = arith.constant 0 : index
    %9 = vector.load %arg2[%c0_8, %c0_9, %c0_10] : memref<1x8x32xf32, #tpu.memory_space<vmem>>, vector<1x8x32xf32>
    %10 = vector.shape_cast %9 : vector<1x8x32xf32> to vector<8x32xf32>
    %11 = arith.truncf %10 : vector<8x32xf32> to vector<8x32xbf16>
    %c0_11 = arith.constant 0 : index
    %c0_12 = arith.constant 0 : index
    %12 = vector.load %arg5[%c0_11, %c0_12] : memref<32x32xbf16, #tpu.memory_space<vmem>>, vector<32x32xbf16>
    %cst_13 = arith.constant dense<0.000000e+00> : vector<8x32xf32>
    %13 = tpu.matmul %11, %12, %cst_13 {dimension_numbers = #tpu.dot_dimension_numbers<[1], [0], [0], [1], [0, 0, 1, 1], [], []>} : vector<8x32xbf16>, vector<32x32xbf16>, vector<8x32xf32> -> vector<8x32xf32>
    %14 = arith.truncf %1 : vector<8x32xf32> to vector<8x32xbf16>
    %c0_14 = arith.constant 0 : index
    %c0_15 = arith.constant 0 : index
    %15 = vector.load %arg6[%c0_14, %c0_15] : memref<32x32xbf16, #tpu.memory_space<vmem>>, vector<32x32xbf16>
    %cst_16 = arith.constant dense<0.000000e+00> : vector<8x32xf32>
    %16 = tpu.matmul %14, %15, %cst_16 {dimension_numbers = #tpu.dot_dimension_numbers<[1], [0], [0], [1], [0, 0, 1, 1], [], []>} : vector<8x32xbf16>, vector<32x32xbf16>, vector<8x32xf32> -> vector<8x32xf32>
    %17 = vector.extract_strided_slice %8 {offsets = [0, 0], sizes = [8, 8], strides = [1, 1]} : vector<8x32xf32> to vector<8x8xf32>
    %18 = arith.truncf %17 : vector<8x8xf32> to vector<8x8xbf16>
    %19 = vector.extract_strided_slice %13 {offsets = [0, 0], sizes = [8, 8], strides = [1, 1]} : vector<8x32xf32> to vector<8x8xf32>
    %20 = arith.truncf %19 : vector<8x8xf32> to vector<8x8xbf16>
    %21 = vector.extract_strided_slice %16 {offsets = [0, 0], sizes = [8, 8], strides = [1, 1]} : vector<8x32xf32> to vector<8x8xf32>
    %22 = arith.truncf %21 : vector<8x8xf32> to vector<8x8xbf16>
    %cst_17 = arith.constant dense<0.000000e+00> : vector<8x8xf32>
    %23 = tpu.matmul %18, %20, %cst_17 {dimension_numbers = #tpu.dot_dimension_numbers<[1], [1], [0], [0], [0, 0, 1, 0], [], []>} : vector<8x8xbf16>, vector<8x8xbf16>, vector<8x8xf32> -> vector<8x8xf32>
    %cst_18 = arith.constant dense<0xFF800000> : vector<8xf32>
    %24 = vector.multi_reduction <maximumf>, %23, %cst_18 [1] : vector<8x8xf32> to vector<8xf32>
    %25 = vector.shape_cast %24 : vector<8xf32> to vector<8x1xf32>
    %26 = vector.broadcast %25 : vector<8x1xf32> to vector<8x8xf32>
    %27 = arith.subf %23, %26 : vector<8x8xf32>
    %28 = math.exp %27 : vector<8x8xf32>
    %cst_19 = arith.constant dense<0.000000e+00> : vector<8xf32>
    %29 = vector.multi_reduction <add>, %28, %cst_19 [1] : vector<8x8xf32> to vector<8xf32>
    %30 = vector.shape_cast %29 : vector<8xf32> to vector<8x1xf32>
    %31 = tpu.reciprocal %30 {approx = true} : vector<8x1xf32> -> vector<8x1xf32>
    %32 = vector.broadcast %31 : vector<8x1xf32> to vector<8x8xf32>
    %33 = arith.mulf %28, %32 : vector<8x8xf32>
    %34 = arith.truncf %33 : vector<8x8xf32> to vector<8x8xbf16>
    %cst_20 = arith.constant dense<0.000000e+00> : vector<8x8xf32>
    %35 = tpu.matmul %34, %22, %cst_20 {dimension_numbers = #tpu.dot_dimension_numbers<[1], [0], [0], [1], [0, 0, 1, 1], [], []>} : vector<8x8xbf16>, vector<8x8xbf16>, vector<8x8xf32> -> vector<8x8xf32>
    %36 = vector.extract_strided_slice %8 {offsets = [0, 8], sizes = [8, 8], strides = [1, 1]} : vector<8x32xf32> to vector<8x8xf32>
    %37 = arith.truncf %36 : vector<8x8xf32> to vector<8x8xbf16>
    %38 = vector.extract_strided_slice %13 {offsets = [0, 8], sizes = [8, 8], strides = [1, 1]} : vector<8x32xf32> to vector<8x8xf32>
    %39 = arith.truncf %38 : vector<8x8xf32> to vector<8x8xbf16>
    %40 = vector.extract_strided_slice %16 {offsets = [0, 8], sizes = [8, 8], strides = [1, 1]} : vector<8x32xf32> to vector<8x8xf32>
    %41 = arith.truncf %40 : vector<8x8xf32> to vector<8x8xbf16>
    %cst_21 = arith.constant dense<0.000000e+00> : vector<8x8xf32>
    %42 = tpu.matmul %37, %39, %cst_21 {dimension_numbers = #tpu.dot_dimension_numbers<[1], [1], [0], [0], [0, 0, 1, 0], [], []>} : vector<8x8xbf16>, vector<8x8xbf16>, vector<8x8xf32> -> vector<8x8xf32>
    %cst_22 = arith.constant dense<0xFF800000> : vector<8xf32>
    %43 = vector.multi_reduction <maximumf>, %42, %cst_22 [1] : vector<8x8xf32> to vector<8xf32>
    %44 = vector.shape_cast %43 : vector<8xf32> to vector<8x1xf32>
    %45 = vector.broadcast %44 : vector<8x1xf32> to vector<8x8xf32>
    %46 = arith.subf %42, %45 : vector<8x8xf32>
    %47 = math.exp %46 : vector<8x8xf32>
    %cst_23 = arith.constant dense<0.000000e+00> : vector<8xf32>
    %48 = vector.multi_reduction <add>, %47, %cst_23 [1] : vector<8x8xf32> to vector<8xf32>
    %49 = vector.shape_cast %48 : vector<8xf32> to vector<8x1xf32>
    %50 = tpu.reciprocal %49 {approx = true} : vector<8x1xf32> -> vector<8x1xf32>
    %51 = vector.broadcast %50 : vector<8x1xf32> to vector<8x8xf32>
    %52 = arith.mulf %47, %51 : vector<8x8xf32>
    %53 = arith.truncf %52 : vector<8x8xf32> to vector<8x8xbf16>
    %cst_24 = arith.constant dense<0.000000e+00> : vector<8x8xf32>
    %54 = tpu.matmul %53, %41, %cst_24 {dimension_numbers = #tpu.dot_dimension_numbers<[1], [0], [0], [1], [0, 0, 1, 1], [], []>} : vector<8x8xbf16>, vector<8x8xbf16>, vector<8x8xf32> -> vector<8x8xf32>
    %55 = vector.extract_strided_slice %8 {offsets = [0, 16], sizes = [8, 8], strides = [1, 1]} : vector<8x32xf32> to vector<8x8xf32>
    %56 = arith.truncf %55 : vector<8x8xf32> to vector<8x8xbf16>
    %57 = vector.extract_strided_slice %13 {offsets = [0, 16], sizes = [8, 8], strides = [1, 1]} : vector<8x32xf32> to vector<8x8xf32>
    %58 = arith.truncf %57 : vector<8x8xf32> to vector<8x8xbf16>
    %59 = vector.extract_strided_slice %16 {offsets = [0, 16], sizes = [8, 8], strides = [1, 1]} : vector<8x32xf32> to vector<8x8xf32>
    %60 = arith.truncf %59 : vector<8x8xf32> to vector<8x8xbf16>
    %cst_25 = arith.constant dense<0.000000e+00> : vector<8x8xf32>
    %61 = tpu.matmul %56, %58, %cst_25 {dimension_numbers = #tpu.dot_dimension_numbers<[1], [1], [0], [0], [0, 0, 1, 0], [], []>} : vector<8x8xbf16>, vector<8x8xbf16>, vector<8x8xf32> -> vector<8x8xf32>
    %cst_26 = arith.constant dense<0xFF800000> : vector<8xf32>
    %62 = vector.multi_reduction <maximumf>, %61, %cst_26 [1] : vector<8x8xf32> to vector<8xf32>
    %63 = vector.shape_cast %62 : vector<8xf32> to vector<8x1xf32>
    %64 = vector.broadcast %63 : vector<8x1xf32> to vector<8x8xf32>
    %65 = arith.subf %61, %64 : vector<8x8xf32>
    %66 = math.exp %65 : vector<8x8xf32>
    %cst_27 = arith.constant dense<0.000000e+00> : vector<8xf32>
    %67 = vector.multi_reduction <add>, %66, %cst_27 [1] : vector<8x8xf32> to vector<8xf32>
    %68 = vector.shape_cast %67 : vector<8xf32> to vector<8x1xf32>
    %69 = tpu.reciprocal %68 {approx = true} : vector<8x1xf32> -> vector<8x1xf32>
    %70 = vector.broadcast %69 : vector<8x1xf32> to vector<8x8xf32>
    %71 = arith.mulf %66, %70 : vector<8x8xf32>
    %72 = arith.truncf %71 : vector<8x8xf32> to vector<8x8xbf16>
    %cst_28 = arith.constant dense<0.000000e+00> : vector<8x8xf32>
    %73 = tpu.matmul %72, %60, %cst_28 {dimension_numbers = #tpu.dot_dimension_numbers<[1], [0], [0], [1], [0, 0, 1, 1], [], []>} : vector<8x8xbf16>, vector<8x8xbf16>, vector<8x8xf32> -> vector<8x8xf32>
    %74 = vector.extract_strided_slice %8 {offsets = [0, 24], sizes = [8, 8], strides = [1, 1]} : vector<8x32xf32> to vector<8x8xf32>
    %75 = arith.truncf %74 : vector<8x8xf32> to vector<8x8xbf16>
    %76 = vector.extract_strided_slice %13 {offsets = [0, 24], sizes = [8, 8], strides = [1, 1]} : vector<8x32xf32> to vector<8x8xf32>
    %77 = arith.truncf %76 : vector<8x8xf32> to vector<8x8xbf16>
    %78 = vector.extract_strided_slice %16 {offsets = [0, 24], sizes = [8, 8], strides = [1, 1]} : vector<8x32xf32> to vector<8x8xf32>
    %79 = arith.truncf %78 : vector<8x8xf32> to vector<8x8xbf16>
    %cst_29 = arith.constant dense<0.000000e+00> : vector<8x8xf32>
    %80 = tpu.matmul %75, %77, %cst_29 {dimension_numbers = #tpu.dot_dimension_numbers<[1], [1], [0], [0], [0, 0, 1, 0], [], []>} : vector<8x8xbf16>, vector<8x8xbf16>, vector<8x8xf32> -> vector<8x8xf32>
    %cst_30 = arith.constant dense<0xFF800000> : vector<8xf32>
    %81 = vector.multi_reduction <maximumf>, %80, %cst_30 [1] : vector<8x8xf32> to vector<8xf32>
    %82 = vector.shape_cast %81 : vector<8xf32> to vector<8x1xf32>
    %83 = vector.broadcast %82 : vector<8x1xf32> to vector<8x8xf32>
    %84 = arith.subf %80, %83 : vector<8x8xf32>
    %85 = math.exp %84 : vector<8x8xf32>
    %cst_31 = arith.constant dense<0.000000e+00> : vector<8xf32>
    %86 = vector.multi_reduction <add>, %85, %cst_31 [1] : vector<8x8xf32> to vector<8xf32>
    %87 = vector.shape_cast %86 : vector<8xf32> to vector<8x1xf32>
    %88 = tpu.reciprocal %87 {approx = true} : vector<8x1xf32> -> vector<8x1xf32>
    %89 = vector.broadcast %88 : vector<8x1xf32> to vector<8x8xf32>
    %90 = arith.mulf %85, %89 : vector<8x8xf32>
    %91 = arith.truncf %90 : vector<8x8xf32> to vector<8x8xbf16>
    %cst_32 = arith.constant dense<0.000000e+00> : vector<8x8xf32>
    %92 = tpu.matmul %91, %79, %cst_32 {dimension_numbers = #tpu.dot_dimension_numbers<[1], [0], [0], [1], [0, 0, 1, 1], [], []>} : vector<8x8xbf16>, vector<8x8xbf16>, vector<8x8xf32> -> vector<8x8xf32>
    %93 = tpu.concatenate %35, %54, %73, %92 in 1 : vector<8x8xf32>, vector<8x8xf32>, vector<8x8xf32>, vector<8x8xf32> -> vector<8x32xf32>
    %94 = arith.truncf %93 : vector<8x32xf32> to vector<8x32xbf16>
    %c0_33 = arith.constant 0 : index
    %c0_34 = arith.constant 0 : index
    %95 = vector.load %arg7[%c0_33, %c0_34] : memref<32x32xbf16, #tpu.memory_space<vmem>>, vector<32x32xbf16>
    %cst_35 = arith.constant dense<0.000000e+00> : vector<8x32xf32>
    %96 = tpu.matmul %94, %95, %cst_35 {dimension_numbers = #tpu.dot_dimension_numbers<[1], [0], [0], [1], [0, 0, 1, 1], [], []>} : vector<8x32xbf16>, vector<32x32xbf16>, vector<8x32xf32> -> vector<8x32xf32>
    %c0_36 = arith.constant 0 : index
    %c0_37 = arith.constant 0 : index
    %97 = vector.load %arg8[%c0_36, %c0_37] : memref<1x32xf32, #tpu.memory_space<vmem>>, vector<1x32xf32>
    %98 = vector.broadcast %97 : vector<1x32xf32> to vector<8x32xf32>
    %99 = arith.addf %96, %98 : vector<8x32xf32>
    %100 = arith.addf %99, %1 : vector<8x32xf32>
    %c0_38 = arith.constant 0 : index
    %c0_39 = arith.constant 0 : index
    %101 = vector.load %arg9[%c0_38, %c0_39] : memref<1x32xf32, #tpu.memory_space<vmem>>, vector<1x32xf32>
    %c0_40 = arith.constant 0 : index
    %c0_41 = arith.constant 0 : index
    %102 = vector.load %arg10[%c0_40, %c0_41] : memref<1x32xf32, #tpu.memory_space<vmem>>, vector<1x32xf32>
    %cst_42 = arith.constant dense<0.000000e+00> : vector<8xf32>
    %103 = vector.multi_reduction <add>, %100, %cst_42 [1] : vector<8x32xf32> to vector<8xf32>
    %104 = vector.shape_cast %103 : vector<8xf32> to vector<8x1xf32>
    %cst_43 = arith.constant 3.200000e+01 : f32
    %105 = vector.broadcast %cst_43 : f32 to vector<8x1xf32>
    %106 = arith.divf %104, %105 : vector<8x1xf32>
    %107 = vector.broadcast %106 : vector<8x1xf32> to vector<8x32xf32>
    %108 = arith.subf %100, %107 : vector<8x32xf32>
    %109 = arith.mulf %108, %108 : vector<8x32xf32>
    %cst_44 = arith.constant dense<0.000000e+00> : vector<8xf32>
    %110 = vector.multi_reduction <add>, %109, %cst_44 [1] : vector<8x32xf32> to vector<8xf32>
    %111 = vector.shape_cast %110 : vector<8xf32> to vector<8x1xf32>
    %cst_45 = arith.constant 3.200000e+01 : f32
    %112 = vector.broadcast %cst_45 : f32 to vector<8x1xf32>
    %113 = arith.divf %111, %112 : vector<8x1xf32>
    %114 = vector.broadcast %106 : vector<8x1xf32> to vector<8x32xf32>
    %115 = arith.subf %100, %114 : vector<8x32xf32>
    %cst_46 = arith.constant 9.99999974E-6 : f32
    %116 = vector.broadcast %cst_46 : f32 to vector<8x1xf32>
    %117 = arith.addf %113, %116 : vector<8x1xf32>
    %118 = math.rsqrt %117 : vector<8x1xf32>
    %119 = vector.broadcast %118 : vector<8x1xf32> to vector<8x32xf32>
    %120 = arith.mulf %115, %119 : vector<8x32xf32>
    %121 = vector.broadcast %101 : vector<1x32xf32> to vector<8x32xf32>
    %122 = arith.mulf %120, %121 : vector<8x32xf32>
    %123 = vector.broadcast %102 : vector<1x32xf32> to vector<8x32xf32>
    %124 = arith.addf %122, %123 : vector<8x32xf32>
    %c0_47 = arith.constant 0 : index
    %c0_48 = arith.constant 0 : index
    %c0_49 = arith.constant 0 : index
    %125 = vector.load %arg11[%c0_47, %c0_48, %c0_49] : memref<1x8x32xf32, #tpu.memory_space<vmem>>, vector<1x8x32xf32>
    %126 = vector.shape_cast %125 : vector<1x8x32xf32> to vector<8x32xf32>
    %127 = vector.shape_cast %124 : vector<8x32xf32> to vector<1x8x32xf32>
    tpu.vector_store %arg11[%c0_47, %c0_48, %c0_49], %127 {strides = array<i32>} : memref<1x8x32xf32, #tpu.memory_space<vmem>>, vector<1x8x32xf32>,
    return
  }
  func.func @transform_0(%arg0: i32) -> (i32, i32, i32) {
    %c0_i32 = arith.constant 0 : i32
    %c0_i32_0 = arith.constant 0 : i32
    %c0_i32_1 = arith.constant 0 : i32
    return %arg0, %c0_i32, %c0_i32_0 : i32, i32, i32
  }
  func.func @transform_1(%arg0: i32) -> (i32, i32, i32) {
    %c0_i32 = arith.constant 0 : i32
    %c0_i32_0 = arith.constant 0 : i32
    %c0_i32_1 = arith.constant 0 : i32
    return %arg0, %c0_i32, %c0_i32_0 : i32, i32, i32
  }
  func.func @transform_2(%arg0: i32) -> (i32, i32, i32) {
    %c0_i32 = arith.constant 0 : i32
    %c0_i32_0 = arith.constant 0 : i32
    %c0_i32_1 = arith.constant 0 : i32
    return %arg0, %c0_i32, %c0_i32_0 : i32, i32, i32
  }
  func.func @transform_3(%arg0: i32) -> (i32, i32) {
    %c0_i32 = arith.constant 0 : i32
    %c0_i32_0 = arith.constant 0 : i32
    %c0_i32_1 = arith.constant 0 : i32
    return %c0_i32, %c0_i32_0 : i32, i32
  }
  func.func @transform_4(%arg0: i32) -> (i32, i32) {
    %c0_i32 = arith.constant 0 : i32
    %c0_i32_0 = arith.constant 0 : i32
    %c0_i32_1 = arith.constant 0 : i32
    return %c0_i32, %c0_i32_0 : i32, i32
  }
  func.func @transform_5(%arg0: i32) -> (i32, i32) {
    %c0_i32 = arith.constant 0 : i32
    %c0_i32_0 = arith.constant 0 : i32
    %c0_i32_1 = arith.constant 0 : i32
    return %c0_i32, %c0_i32_0 : i32, i32
  }
  func.func @transform_6(%arg0: i32) -> (i32, i32) {
    %c0_i32 = arith.constant 0 : i32
    %c0_i32_0 = arith.constant 0 : i32
    %c0_i32_1 = arith.constant 0 : i32
    return %c0_i32, %c0_i32_0 : i32, i32
  }
  func.func @transform_7(%arg0: i32) -> (i32, i32) {
    %c0_i32 = arith.constant 0 : i32
    %c0_i32_0 = arith.constant 0 : i32
    %c0_i32_1 = arith.constant 0 : i32
    return %c0_i32, %c0_i32_0 : i32, i32
  }
  func.func @transform_8(%arg0: i32) -> (i32, i32) {
    %c0_i32 = arith.constant 0 : i32
    %c0_i32_0 = arith.constant 0 : i32
    %c0_i32_1 = arith.constant 0 : i32
    return %c0_i32, %c0_i32_0 : i32, i32
  }
  func.func @transform_9(%arg0: i32) -> (i32, i32) {
    %c0_i32 = arith.constant 0 : i32
    %c0_i32_0 = arith.constant 0 : i32
    %c0_i32_1 = arith.constant 0 : i32
    return %c0_i32, %c0_i32_0 : i32, i32
  }
  func.func @transform_10(%arg0: i32) -> (i32, i32, i32) {
    %c0_i32 = arith.constant 0 : i32
    %c0_i32_0 = arith.constant 0 : i32
    %c0_i32_1 = arith.constant 0 : i32
    return %arg0, %c0_i32, %c0_i32_0 : i32, i32, i32
  }
}

module attributes {stable_mosaic.version = 11 : i64} {
  func.func @_logits_softmax_kernel(%arg0: i32, %arg1: memref<16x32xf32, #tpu.memory_space<vmem>>, %arg2: memref<32x128xbf16, #tpu.memory_space<vmem>>, %arg3: memref<1x128xf32, #tpu.memory_space<vmem>>, %arg4: memref<16x128xf32, #tpu.memory_space<vmem>>) attributes {dimension_semantics = [#tpu.dimension_semantics<parallel>], iteration_bounds = array<i64: 1>, scalar_prefetch = 0 : i64, scratch_operands = 0 : i64, tpu.core_type = #tpu.core_type<tc>, window_params = [{transform_indices = @transform_0, window_bounds = array<i64: 16, 32>}, {pipeline_mode = #tpu.pipeline_mode<synchronous>, transform_indices = @transform_1, window_bounds = array<i64: 32, 128>}, {pipeline_mode = #tpu.pipeline_mode<synchronous>, transform_indices = @transform_2, window_bounds = array<i64: 1, 128>}, {transform_indices = @transform_3, window_bounds = array<i64: 16, 128>}]} {
    %c0 = arith.constant 0 : index
    %c0_0 = arith.constant 0 : index
    %0 = vector.load %arg1[%c0, %c0_0] : memref<16x32xf32, #tpu.memory_space<vmem>>, vector<16x32xf32>
    %1 = arith.truncf %0 : vector<16x32xf32> to vector<16x32xbf16>
    %c0_1 = arith.constant 0 : index
    %c0_2 = arith.constant 0 : index
    %2 = vector.load %arg2[%c0_1, %c0_2] : memref<32x128xbf16, #tpu.memory_space<vmem>>, vector<32x128xbf16>
    %cst = arith.constant dense<0.000000e+00> : vector<16x128xf32>
    %3 = tpu.matmul %1, %2, %cst {dimension_numbers = #tpu.dot_dimension_numbers<[1], [0], [0], [1], [0, 0, 1, 1], [], []>} : vector<16x32xbf16>, vector<32x128xbf16>, vector<16x128xf32> -> vector<16x128xf32>
    %c0_3 = arith.constant 0 : index
    %c0_4 = arith.constant 0 : index
    %4 = vector.load %arg3[%c0_3, %c0_4] : memref<1x128xf32, #tpu.memory_space<vmem>>, vector<1x128xf32>
    %5 = vector.broadcast %4 : vector<1x128xf32> to vector<16x128xf32>
    %6 = arith.addf %3, %5 : vector<16x128xf32>
    %cst_5 = arith.constant dense<0xFF800000> : vector<16xf32>
    %7 = vector.multi_reduction <maximumf>, %6, %cst_5 [1] : vector<16x128xf32> to vector<16xf32>
    %8 = vector.shape_cast %7 : vector<16xf32> to vector<16x1xf32>
    %9 = vector.broadcast %8 : vector<16x1xf32> to vector<16x128xf32>
    %10 = arith.subf %6, %9 : vector<16x128xf32>
    %11 = math.exp %10 : vector<16x128xf32>
    %cst_6 = arith.constant dense<0.000000e+00> : vector<16xf32>
    %12 = vector.multi_reduction <add>, %11, %cst_6 [1] : vector<16x128xf32> to vector<16xf32>
    %13 = vector.shape_cast %12 : vector<16xf32> to vector<16x1xf32>
    %14 = vector.broadcast %13 : vector<16x1xf32> to vector<16x128xf32>
    %15 = arith.divf %11, %14 : vector<16x128xf32>
    %c0_7 = arith.constant 0 : index
    %c0_8 = arith.constant 0 : index
    %16 = vector.load %arg4[%c0_7, %c0_8] : memref<16x128xf32, #tpu.memory_space<vmem>>, vector<16x128xf32>
    tpu.vector_store %arg4[%c0_7, %c0_8], %15 {strides = array<i32>} : memref<16x128xf32, #tpu.memory_space<vmem>>, vector<16x128xf32>,
    return
  }
  func.func @transform_0(%arg0: i32) -> (i32, i32) {
    %c0_i32 = arith.constant 0 : i32
    %c0_i32_0 = arith.constant 0 : i32
    return %arg0, %c0_i32 : i32, i32
  }
  func.func @transform_1(%arg0: i32) -> (i32, i32) {
    %c0_i32 = arith.constant 0 : i32
    %c0_i32_0 = arith.constant 0 : i32
    %c0_i32_1 = arith.constant 0 : i32
    return %c0_i32, %c0_i32_0 : i32, i32
  }
  func.func @transform_2(%arg0: i32) -> (i32, i32) {
    %c0_i32 = arith.constant 0 : i32
    %c0_i32_0 = arith.constant 0 : i32
    %c0_i32_1 = arith.constant 0 : i32
    return %c0_i32, %c0_i32_0 : i32, i32
  }
  func.func @transform_3(%arg0: i32) -> (i32, i32) {
    %c0_i32 = arith.constant 0 : i32
    %c0_i32_0 = arith.constant 0 : i32
    return %arg0, %c0_i32 : i32, i32
  }
}

</mosaic_0001>

<bundles_post_ra>
// kernel: transformer_forward.12
= control target key start
LH: loop header
LB: loop body
LE: loop exit
PB: predicated region body
PF: predicated region fallthrough
CT: control target
= control target key end

     0   :  { %v337_v0 = vmov 0.0   ;;  %vm338_vm0 = vmmov 0   ;;  %vm53_vm1 = vcmask 261120   ;;  %s440_s1 = inlined_call_operand.vmem [shape: bf16[32,128], index: 1, kind: input, shape index: {}]   ;;  %s441_s0 = inlined_call_operand.vmem [shape: f32[16,32], index: 0, kind: input, shape index: {}]   ;;  %s442_s3 = inlined_call_operand.vmem [shape: bf16[128,32], index: 3, kind: input, shape index: {}]   ;;  %s443_s2 = inlined_call_operand.vmem [shape: f32[1,128], index: 2, kind: input, shape index: {}]   ;;  %s444_s4 = inlined_call_operand.vmem [shape: f32[1,32], index: 4, kind: input, shape index: {}]   ;;  %s445_s5 = inlined_call_operand.vmem [shape: f32[1,32], index: 5, kind: input, shape index: {}]   ;;  %s446_s6 = inlined_call_operand.vmem [shape: f32[1,32], index: 6, kind: input, shape index: {}]   ;;  %s447_s7 = inlined_call_operand.vmem [shape: f32[16,32], index: 7, kind: output, shape index: {}]  }
   0x1   :  { %293 = vmatprep.subr.bf16.mxu0 %v337_v0  ;;  %v323_v1 = vld [vmem:[%s440_s1 + $0x8] sm:$0xff]   ;;  %297 = vmatprep.mubr.msk.bf16.mxu0 %vm338_vm0, %v337_v0  ;;  %v324_v2 = vld [vmem:[%s440_s1] sm:$0xff]   ;;  %v325_v5 = vld [vmem:[%s442_s3 + $0x38] sm:$0xff]  }
   0x2   :  { %301 = vmatprep.subr.bf16.mxu1 %v337_v0  ;;  %317 = vmatprep.mubr.msk.bf16.mxu1 %vm338_vm0, %v337_v0  ;;  %v27_v3 = vld [vmem:[%s441_s0] sm:$0xff]  ;;  %v28_v4 = vld [vmem:[%s441_s0 + $0x8] sm:$0xff]  ;;  %v326_v7 = vld [vmem:[%s442_s3 + $0x30] sm:$0xff]  }
   0x3   :  { %294 = vmatpush3.bf16.msra.mxu0 %v323_v1  ;;  %v29_v6 = vpack.c.bf16 %v28_v4, %v27_v3  ;;  %302 = vmatpush3.bf16.msra.mxu1 %v325_v5  ;;  %v327_v8 = vld [vmem:[%s442_s3 + $0x28] sm:$0xff]   ;;  %v328_v9 = vld [vmem:[%s442_s3 + $0x20] sm:$0xff]   ;;  %v329_v10 = vld [vmem:[%s442_s3 + $0x18] sm:$0xff]  }
   0x4   :  { %295 = vmatprep.subr.bf16.mxu0 %v337_v0  ;;  %303 = vmatprep.subr.bf16.mxu1 %v337_v0  ;;  %v330_v11 = vld [vmem:[%s442_s3 + $0x10] sm:$0xff]   ;;  %v331_v12 = vld [vmem:[%s442_s3 + $0x8] sm:$0xff]   ;;  %v332_v13 = vld [vmem:[%s442_s3] sm:$0xff]  }
   0x5   :  { %v266_v14 = vld [vmem:[%s443_s2] ss:$0 sm:$0xff] }
   0x6   :  { %v270_v24 = vld [vmem:[%s444_s4] ss:$0 sm:$0xff] }
   0x7   :  { %296 = vmatpush3.bf16.msra.mxu0 %v324_v2  ;;  %304 = vmatpush3.bf16.msra.mxu1 %v326_v7  ;;  %v279_v52 = vld [vmem:[%s445_s5] ss:$0 sm:$0xff] }
   0x8   :  { %305 = vmatprep.subr.bf16.mxu1 %v337_v0  ;;  %v280_v54 = vld [vmem:[%s446_s6] ss:$0 sm:$0xff] }
   0xa   :  { %298 = vmatmul.mubr.msk.bf16.vlgmr.msra.gmra.mxu0 %vm53_vm1, %v29_v6 }
   0xb   :  { %306 = vmatpush3.bf16.msra.mxu1 %v327_v8 }
   0xc   :  { %307 = vmatprep.subr.bf16.mxu1 %v337_v0 }
   0xf   :  { %308 = vmatpush3.bf16.msra.mxu1 %v328_v9 }
  0x10   :  { %309 = vmatprep.subr.bf16.mxu1 %v337_v0 }
  0x13   :  { %310 = vmatpush3.bf16.msra.mxu1 %v329_v10 }
  0x14   :  { %311 = vmatprep.subr.bf16.mxu1 %v337_v0 }
  0x17   :  { %312 = vmatpush3.bf16.msra.mxu1 %v330_v11 }
  0x18   :  { %313 = vmatprep.subr.bf16.mxu1 %v337_v0 }
  0x1b   :  { %314 = vmatpush3.bf16.msra.mxu1 %v331_v12 }
  0x1c   :  { %315 = vmatprep.subr.bf16.mxu1 %v337_v0 }
  0x1f   :  { %316 = vmatpush3.bf16.msra.mxu1 %v332_v13 }
  0xca   :  { %v91_v15 = vpop.f32.mrf.mxu0 }
  0xcb   :  { %v92_v17 = vadd.f32 %v266_v14, %v91_v15 }
  0xcc   :  { %v299_v16 = vpop.f32.mrf.mxu0 }
  0xcd   :  { %v98_v21 = vmax.f32 %v92_v17, 0.0 }
  0xce   :  { %v94_v18 = vpop.f32.mrf.mxu0 }
  0xcf   :  { %v95_v19 = vadd.f32 %v266_v14, %v94_v18 }
  0xd0   :  { %v300_v20 = vpop.f32.mrf.mxu0 }
  0xd1   :  { %v99_v22 = vmax.f32 %v95_v19, 0.0 }
  0xd3   :  { %v100_v23 = vpack.c.bf16 %v99_v22, %v98_v21 }
  0xd5   :  { %318 = vmatmul.mubr.bf16.vlgmr.msra.gmra.mxu1 %v100_v23 }
 0x195   :  { %v206_v25 = vpop.f32.mrf.mxu1 }
 0x196   :  { %v207_v26 = vadd.f32 %v270_v24, %v206_v25 }
 0x197   :  { %v319_v27 = vpop.f32.mrf.mxu1 }
 0x198   :  { %v213_v28 = vadd.f32 %v207_v26, %v27_v3 }
 0x199   :  { %v209_v29 = vpop.f32.mrf.mxu1 }
 0x19a   :  { %v210_v30 = vadd.f32 %v270_v24, %v209_v29  ;;  %v217_v31 = vsel %vm53_vm1, %v213_v28, 0.0 }
 0x19b   :  { %218 = vadd.xlane.f32.xlu0 %v217_v31  ;;  %v320_v32 = vpop.f32.mrf.mxu1 }
 0x19c   :  { %v214_v33 = vadd.f32 %v210_v30, %v28_v4 }
 0x19e   :  { %v220_v34 = vsel %vm53_vm1, %v214_v33, 0.0 }
 0x19f   :  { %221 = vadd.xlane.f32.xlu0 %v220_v34 }
 0x224   :  { %v219_v35 = vpop.xlane.xlu0 %218 }
 0x225   :  { %v224_v36 = vmul.f32 0.03125, %v219_v35 }
 0x227   :  { %v226_v37 = vsub.f32 %v213_v28, %v224_v36 }
 0x228   :  { %v222_v38 = vpop.xlane.xlu0 %221 }
 0x229   :  { %v225_v39 = vmul.f32 0.03125, %v222_v38  ;;  %v228_v40 = vmul.f32 %v226_v37, %v226_v37 }
 0x22b   :  { %v227_v41 = vsub.f32 %v214_v33, %v225_v39  ;;  %v230_v42 = vsel %vm53_vm1, %v228_v40, 0.0 }
 0x22c   :  { %231 = vadd.xlane.f32.xlu1 %v230_v42 }
 0x22d   :  { %v229_v43 = vmul.f32 %v227_v41, %v227_v41 }
 0x22f   :  { %v233_v44 = vsel %vm53_vm1, %v229_v43, 0.0 }
 0x230   :  { %234 = vadd.xlane.f32.xlu1 %v233_v44 }
 0x2b5   :  { %v232_v45 = vpop.xlane.xlu1 %231 }
 0x2b6   :  { %v236_v46 = vmul.f32 0.03125, %v232_v45 }
 0x2b8   :  { %v238_v47 = vadd.f32 1e-05, %v236_v46 }
 0x2b9   :  { %v235_v48 = vpop.xlane.xlu1 %234 }
 0x2ba   :  { %333 = vrsqrt.f32 %v238_v47  ;;  %v237_v49 = vmul.f32 0.03125, %v235_v48 }
 0x2bc   :  { %v239_v50 = vadd.f32 1e-05, %v237_v49 }
 0x2be   :  { %335 = vrsqrt.f32 %v239_v50 }
 0x2c7   :  { %v334_v51 = vpop.eup %333 }
 0x2c8   :  { %v242_v53 = vmul.f32 %v334_v51, %v226_v37 }
 0x2ca   :  { %v250_v55 = vmul.f32 %v279_v52, %v242_v53 }
 0x2cb   :  { %v336_v56 = vpop.eup %335 }
 0x2cc   :  { %v258_v57 = vadd.f32 %v280_v54, %v250_v55  ;;  %v243_v58 = vmul.f32 %v336_v56, %v227_v41 }
 0x2ce   :  { %260 = vst.msk [vmem:[%s447_s7] sm:$0xff] %vm53_vm1, %v258_v57  ;;  %v251_v59 = vmul.f32 %v279_v52, %v243_v58 }
 0x2d0   :  { %v259_v60 = vadd.f32 %v280_v54, %v251_v59 }
 0x2d2   :  { %261 = vst.msk [vmem:[%s447_s7 + $0x8] sm:$0xff] %vm53_vm1, %v259_v60 }

// kernel: transformer_forward.15
= control target key start
LH: loop header
LB: loop body
LE: loop exit
PB: predicated region body
PF: predicated region fallthrough
CT: control target
= control target key end

     0   :  { %s1179_s24 = smov 0   ;;  %s1308_s0 = inlined_call_operand.vmem [shape: f32[2,8,32], index: 0, kind: input, shape index: {}]   ;;  %s1309_s1 = inlined_call_operand.vmem [shape: bf16[32,96], index: 1, kind: input, shape index: {}]   ;;  %s1310_s2 = inlined_call_operand.vmem [shape: bf16[32,32], index: 2, kind: input, shape index: {}]   ;;  %s1311_s3 = inlined_call_operand.vmem [shape: f32[1,32], index: 3, kind: input, shape index: {}]   ;;  %s1312_s4 = inlined_call_operand.vmem [shape: f32[1,32], index: 4, kind: input, shape index: {}]   ;;  %s1313_s5 = inlined_call_operand.vmem [shape: f32[1,32], index: 5, kind: input, shape index: {}]   ;;  %s1314_s6 = inlined_call_operand.vmem [shape: f32[8,8], index: 6, kind: input, shape index: {}]   ;;  %s1315_s7 = inlined_call_operand.vmem [shape: f32[2,8,32], index: 7, kind: output, shape index: {}]  }
   0x1 LB: > { %s957_s25 = sadd.s32 4294967295, %s1121_s24   ;;  %p961_p0 = scmp.ge.s32.totalorder %s1121_s24, 1  ;;  %s1121_s24 = sphi %s1179_s24, %s17_s24  }
   0x2   : > { %p236_p1 = scmp.lt.s32.totalorder %s1121_s24, 3 }
   0x4   : > { %p237_p2 = pnand %p961_p0, %p236_p1 }
   0x5   : > { %p266_p3 = scmp.lt.s32.totalorder (!%p237_p2), %s957_s25, 1  ;;  %s1125_s11 = smov (!%p237_p2), 96  }
   0x6   : > { %240 = sbr.rel (%p237_p2) target bundleno = 1724 (0x6bc), region = 48  ;;  %s1126_s12 = smov (!%p237_p2), 120  }
   0x7   : > { %s1127_s13 = smov (!%p237_p2), 88   ;;  %s1128_s14 = smov (!%p237_p2), 80  }
   0x8   : > { %s1129_s15 = smov (!%p237_p2), 112   ;;  %s1130_s16 = smov (!%p237_p2), 72  }
   0x9   : > { %s1131_s17 = smov (!%p237_p2), 104   ;;  %s1132_s20 = smov (!%p237_p2), 56  }
   0xa   : > { %s1133_s21 = smov (!%p237_p2), 64   ;;  %s1134_s22 = smov (!%p237_p2), 40  }
   0xb   : > { %v1093_v0 = vld [vmem:[%s1309_s1 + $0x8] sm:$0xff]   ;;  %v1123_v1 = vmov 0.0   ;;  %v1094_v2 = vld [vmem:[%s1309_s1] sm:$0xff]   ;;  %vm1124_vm0 = vmmov 0   ;;  %s1317_s25 = smov (!%p266_p3, %s957_s25), 1  ;;  %vm294_vm1 = vcmask 261120  }
   0xc   : > { %1005 = vmatprep.subr.bf16.mxu0 %v1123_v1  ;;  %1013 = vmatprep.subr.bf16.mxu1 %v1123_v1  ;;  %s962_s30 = sshll.u32 %s1317_s25, 3  ;;  %vm344_vm2 = vcmask 64512   ;;  %v275_v23 = vld [vmem:[%s1314_s6] sm:$0xff]  ;;  %s1135_s23 = smov 48   ;;  %vm410_vm4 = vcmask 1043456   ;;  %vm801_vm5 = vcmask 130048  }
   0xd   : > { %1006 = vmatpush3.bf16.msra.mxu0 %v1093_v0  ;;  %1009 = vmatprep.mubr.msk.bf16.mxu0 %vm1124_vm0, %v1123_v1  ;;  %s269_s10 = scalar_lea.vmem %s1308_s0, %s962_s30  ;;  %vm391_vm3 = vcmp.eq.f32.partialorder %v275_v23, 0.0  ;;  %s1136_s26 = smov 8   ;;  %vm803_vm6 = vcmask 195584  }
   0xe   : > { %1007 = vmatprep.subr.bf16.mxu0 %v1123_v1  ;;  %1015 = vmatprep.mubr.msk.bf16.mxu1 %vm1124_vm0, %v1123_v1  ;;  %v1209_v3 = vld [vmem:[%s269_s10] sm:$0xff]  ;;  %s1137_s9 = smov 16   ;;  %s1138_s10 = smov 24  }
   0xf   : > { %v277_v4 = vpack.c.bf16 %v1209_v3, %v1209_v3  ;;  %s273_s19 = scalar_lea.vmem %s1315_s7, %s962_s30 }
  0x11   : > { %1008 = vmatpush3.bf16.msra.mxu0 %v1094_v2 }
  0x12   : > { %1019 = vmatprep.subr.bf16.mxu0 %v1123_v1 }
  0x14   : > { %1010 = vmatmul.mubr.msk.bf16.vlgmr.msra.gmra.mxu0 %vm294_vm1, %v277_v4 }
  0x15   : > { %1021 = vmatprep.mubr.msk.bf16.mxu0 %vm1124_vm0, %v1123_v1 }
  0xd4   : > { %v332_v5 = vpop.f32.mrf.mxu0 }
  0xd5   : > { %v338_v6 = vmul.f32 0.35355338, %v332_v5  ;;  %v1216_v7 = vpack.c.bf16 %v332_v5, %v332_v5 }
  0xd6   : > { %v1011_v8 = vpop.f32.mrf.mxu0 }
  0xd7   : > { %v339_v9 = vpack.c.bf16 %v338_v6, %v338_v6  ;;  %342 = vrot.lane.b32.xlu0 %v1216_v7, %s1125_s11 }
  0xd8   : > { %v335_v10 = vpop.f32.mrf.mxu0 }
  0xd9   : > { %455 = vrot.lane.b32.xlu1 %v339_v9, %s1126_s12 }
  0xda   : > { %v1012_v11 = vpop.f32.mrf.mxu0 }
  0xdb   : > { %457 = vrot.lane.b32.xlu0 %v1216_v7, %s1127_s13 }
  0xdd   : > { %568 = vrot.lane.b32.xlu1 %v1216_v7, %s1128_s14 }
  0xdf   : > { %566 = vrot.lane.b32.xlu0 %v339_v9, %s1129_s15 }
  0xe1   : > { %679 = vrot.lane.b32.xlu1 %v1216_v7, %s1130_s16 }
  0xe3   : > { %677 = vrot.lane.b32.xlu0 %v339_v9, %s1131_s17 }
 0x149   : > { %v343_v12 = vpop.permute.xlu0 %342 }
 0x14a   : > { %v349_v13 = vsel %vm344_vm2, %v343_v12, 0 }
 0x14b   : > { %1014 = vmatpush3.bf16.xpose.msra.mxu1 %v349_v13  ;;  %v456_v15 = vpop.permute.xlu1 %455 }
 0x14c   : > { %1025 = vmatprep.subr.bf16.mxu1 %v1123_v1 }
 0x14d   : > { %v458_v14 = vpop.permute.xlu0 %457 }
 0x14e   : > { %v463_v16 = vsel %vm344_vm2, %v458_v14, 0 }
 0x14f   : > { %v569_v17 = vpop.permute.xlu1 %568 }
 0x150   : > { %v574_v18 = vsel %vm344_vm2, %v569_v17, 0 }
 0x151   : > { %v567_v20 = vpop.permute.xlu0 %566 }
 0x152   : > { %1016 = vmatmul.mubr.msk.bf16.vlgmr.msra.gmra.mxu1 %vm344_vm2, %v339_v9 }
 0x153   : > { %1026 = vmatpush3.bf16.xpose.msra.mxu1 %v463_v16  ;;  %1027 = vmatprep.mubr.msk.bf16.mxu1 %vm1124_vm0, %v1123_v1  ;;  %v680_v19 = vpop.permute.xlu1 %679 }
 0x154   : > { %1037 = vmatprep.subr.bf16.mxu1 %v1123_v1  ;;  %v685_v21 = vsel %vm344_vm2, %v680_v19, 0 }
 0x155   : > { %v678_v22 = vpop.permute.xlu0 %677 }
 0x15a   : > { %1028 = vmatmul.mubr.msk.bf16.vlgmr.msra.gmra.mxu1 %vm344_vm2, %v456_v15 }
 0x15b   : > { %1038 = vmatpush3.bf16.xpose.msra.mxu1 %v574_v18  ;;  %1039 = vmatprep.mubr.msk.bf16.mxu1 %vm1124_vm0, %v1123_v1 }
 0x15c   : > { %1049 = vmatprep.subr.bf16.mxu1 %v1123_v1 }
 0x162   : > { %1040 = vmatmul.mubr.msk.bf16.vlgmr.msra.gmra.mxu1 %vm344_vm2, %v567_v20 }
 0x163   : > { %1050 = vmatpush3.bf16.xpose.msra.mxu1 %v685_v21  ;;  %1051 = vmatprep.mubr.msk.bf16.mxu1 %vm1124_vm0, %v1123_v1 }
 0x164   : > { %1061 = vmatprep.subr.bf16.mxu1 %v1123_v1 }
 0x16a   : > { %1052 = vmatmul.mubr.msk.bf16.vlgmr.msra.gmra.mxu1 %vm344_vm2, %v678_v22 }
 0x16b   : > { %1065 = vmatprep.mubr.msk.bf16.mxu1 %vm1124_vm0, %v1123_v1 }
 0x212   : > { %v385_v24 = vpop.f32.mrf.mxu1 }
 0x213   : > { %v392_v25 = vsel %vm391_vm3, -1e+20, %v385_v24 }
 0x214   : > { %v1017_v26 = vpop.f32.mrf.mxu1  ;;  %v393_v27 = vsel %vm344_vm2, %v392_v25, -inf }
 0x215   : > { %394 = vmax.xlane.f32.xlu1 %v393_v27 }
 0x216   : > { %v388_v28 = vpop.f32.mrf.mxu1 }
 0x218   : > { %v1018_v29 = vpop.f32.mrf.mxu1 }
 0x21a   : > { %v499_v30 = vpop.f32.mrf.mxu1 }
 0x21b   : > { %v505_v31 = vsel %vm391_vm3, -1e+20, %v499_v30 }
 0x21c   : > { %v1029_v32 = vpop.f32.mrf.mxu1  ;;  %v506_v33 = vsel %vm344_vm2, %v505_v31, -inf }
 0x21d   : > { %507 = vmax.xlane.f32.xlu0 %v506_v33 }
 0x21e   : > { %v502_v34 = vpop.f32.mrf.mxu1 }
 0x220   : > { %v1030_v35 = vpop.f32.mrf.mxu1 }
 0x222   : > { %v610_v36 = vpop.f32.mrf.mxu1 }
 0x223   : > { %v616_v37 = vsel %vm391_vm3, -1e+20, %v610_v36 }
 0x224   : > { %v1041_v38 = vpop.f32.mrf.mxu1  ;;  %v617_v39 = vsel %vm344_vm2, %v616_v37, -inf }
 0x225   : > { %618 = vmax.xlane.f32.xlu0 %v617_v39  ;;  %v1095_v38 = vld [vmem:[%s1310_s2 + $0x8] sm:$0xff]   ;;  %v1096_v39 = vld [vmem:[%s1310_s2] sm:$0xff]  }
 0x226   : > { %v613_v40 = vpop.f32.mrf.mxu1  ;;  %1062 = vmatpush3.bf16.msra.mxu1 %v1095_v38 }
 0x227   : > { %1063 = vmatprep.subr.bf16.mxu1 %v1123_v1 }
 0x228   : > { %v1042_v41 = vpop.f32.mrf.mxu1 }
 0x22a   : > { %v721_v42 = vpop.f32.mrf.mxu1  ;;  %1064 = vmatpush3.bf16.msra.mxu1 %v1096_v39 }
 0x22b   : > { %v727_v43 = vsel %vm391_vm3, -1e+20, %v721_v42 }
 0x22c   : > { %v1053_v44 = vpop.f32.mrf.mxu1  ;;  %v728_v45 = vsel %vm344_vm2, %v727_v43, -inf }
 0x22d   : > { %729 = vmax.xlane.f32.xlu1 %v728_v45 }
 0x22e   : > { %v724_v46 = vpop.f32.mrf.mxu1 }
 0x230   : > { %v1054_v47 = vpop.f32.mrf.mxu1 }
 0x29e   : > { %v395_v48 = vpop.xlane.xlu1 %394 }
 0x29f   : > { %v396_v49 = vsub.f32 %v392_v25, %v395_v48 }
 0x2a1   : > { %v397_v50 = vmul.f32 1.442695, %v396_v49 }
 0x2a3   : > { %1097 = vpow2.f32 %v397_v50 }
 0x2a6   : > { %v508_v51 = vpop.xlane.xlu0 %507 }
 0x2a7   : > { %v509_v52 = vsub.f32 %v505_v31, %v508_v51 }
 0x2a9   : > { %v510_v53 = vmul.f32 1.442695, %v509_v52 }
 0x2ab   : > { %1099 = vpow2.f32 %v510_v53 }
 0x2ae   : > { %v619_v54 = vpop.xlane.xlu0 %618 }
 0x2af   : > { %v620_v55 = vsub.f32 %v616_v37, %v619_v54  ;;  %v975_v54 = vld [vmem:[%s1311_s3] ss:$0 sm:$0xff] }
 0x2b0   : > { %v1098_v56 = vpop.eup %1097 }
 0x2b1   : > { %v621_v57 = vmul.f32 1.442695, %v620_v55  ;;  %v399_v58 = vsel %vm344_vm2, %v1098_v56, 0.0 }
 0x2b2   : > { %400 = vadd.xlane.f32.xlu0 %v399_v58 }
 0x2b3   : > { %1101 = vpow2.f32 %v621_v57 }
 0x2b6   : > { %v730_v63 = vpop.xlane.xlu1 %729 }
 0x2b7   : > { %v731_v0 = vsub.f32 %v727_v43, %v730_v63 }
 0x2b8   : > { %v1100_v59 = vpop.eup %1099 }
 0x2b9   : > { %v512_v60 = vsel %vm344_vm2, %v1100_v59, 0.0  ;;  %v732_v2 = vmul.f32 1.442695, %v731_v0 }
 0x2ba   : > { %513 = vadd.xlane.f32.xlu1 %v512_v60 }
 0x2bb   : > { %1103 = vpow2.f32 %v732_v2 }
 0x2c0   : > { %v1102_v61 = vpop.eup %1101 }
 0x2c1   : > { %v623_v62 = vsel %vm344_vm2, %v1102_v61, 0.0 }
 0x2c2   : > { %624 = vadd.xlane.f32.xlu0 %v623_v62 }
 0x2c8   : > { %v1104_v4 = vpop.eup %1103 }
 0x2c9   : > { %v734_v5 = vsel %vm344_vm2, %v1104_v4, 0.0 }
 0x2cb   : > { %518 = vrot.lane.b32.xlu1 %v1216_v7, %s1132_s20 }
 0x2d8   : > { %405 = vrot.lane.b32.xlu0 %v1216_v7, %s1133_s21 }
 0x2dc   : > { %740 = vrot.lane.b32.xlu0 %v1216_v7, %s1134_s22 }
 0x2ef   : > { %735 = vadd.xlane.f32.xlu1 %v734_v5 }
 0x300   : > { %629 = vrot.lane.b32.xlu1 %v1216_v7, %s1135_s23 }
 0x33b   : > { %v401_v6 = vpop.xlane.xlu0 %400 }
 0x33c   : > { %1105 = vrcp.f32 %v401_v6 }
 0x343   : > { %v514_v8 = vpop.xlane.xlu1 %513 }
 0x344   : > { %1107 = vrcp.f32 %v514_v8 }
 0x347   : > { %v519_v14 = vpop.permute.xlu1 %518 }
 0x348   : > { %v524_v17 = vsel %vm410_vm4, %v519_v14, 0 }
 0x349   : > { %v1106_v9 = vpop.eup %1105 }
 0x34a   : > { %v403_v11 = vmul.f32 %v1106_v9, %v1098_v56 }
 0x34b   : > { %v625_v10 = vpop.xlane.xlu0 %624 }
 0x34c   : > { %v404_v15 = vpack.c.bf16 %v403_v11, %v403_v11  ;;  %1109 = vrcp.f32 %v625_v10  ;;  %v980_v11 = vld [vmem:[%s1313_s5] ss:$0 sm:$0xff] }
 0x34f   : > { %v406_v12 = vpop.permute.xlu0 %405 }
 0x350   : > { %v412_v13 = vsel %vm410_vm4, %v406_v12, 0 }
 0x351   : > { %1020 = vmatpush3.bf16.msra.mxu0 %v412_v13  ;;  %v1108_v16 = vpop.eup %1107 }
 0x352   : > { %1031 = vmatprep.subr.bf16.mxu0 %v1123_v1  ;;  %v516_v7 = vmul.f32 %v1108_v16, %v1100_v59 }
 0x353   : > { %v741_v24 = vpop.permute.xlu0 %740 }
 0x354   : > { %1022 = vmatmul.mubr.msk.bf16.vlgmr.msra.gmra.mxu0 %vm344_vm2, %v404_v15  ;;  %v517_v18 = vpack.c.bf16 %v516_v7, %v516_v7  ;;  %v746_v26 = vsel %vm410_vm4, %v741_v24, 0 }
 0x355   : > { %1032 = vmatpush3.bf16.msra.mxu0 %v524_v17  ;;  %1033 = vmatprep.mubr.msk.bf16.mxu0 %vm1124_vm0, %v1123_v1 }
 0x356   : > { %1043 = vmatprep.subr.bf16.mxu0 %v1123_v1 }
 0x359   : > { %v1110_v19 = vpop.eup %1109 }
 0x35a   : > { %v627_v21 = vmul.f32 %v1110_v19, %v1102_v61 }
 0x35c   : > { %1034 = vmatmul.mubr.msk.bf16.vlgmr.msra.gmra.mxu0 %vm344_vm2, %v517_v18  ;;  %v628_v25 = vpack.c.bf16 %v627_v21, %v627_v21 }
 0x35d   : > { %1045 = vmatprep.mubr.msk.bf16.mxu0 %vm1124_vm0, %v1123_v1 }
 0x378   : > { %v736_v20 = vpop.xlane.xlu1 %735 }
 0x379   : > { %1111 = vrcp.f32 %v736_v20 }
 0x37c   : > { %v630_v22 = vpop.permute.xlu1 %629 }
 0x37d   : > { %v635_v23 = vsel %vm410_vm4, %v630_v22, 0 }
 0x37e   : > { %1044 = vmatpush3.bf16.msra.mxu0 %v635_v23 }
 0x37f   : > { %1055 = vmatprep.subr.bf16.mxu0 %v1123_v1 }
 0x381   : > { %1046 = vmatmul.mubr.msk.bf16.vlgmr.msra.gmra.mxu0 %vm344_vm2, %v628_v25 }
 0x382   : > { %1056 = vmatpush3.bf16.msra.mxu0 %v746_v26  ;;  %1057 = vmatprep.mubr.msk.bf16.mxu0 %vm1124_vm0, %v1123_v1 }
 0x386   : > { %v1112_v27 = vpop.eup %1111 }
 0x387   : > { %v738_v28 = vmul.f32 %v1112_v27, %v1104_v4 }
 0x389   : > { %v739_v29 = vpack.c.bf16 %v738_v28, %v738_v28 }
 0x38b   : > { %1058 = vmatmul.mubr.msk.bf16.vlgmr.msra.gmra.mxu0 %vm344_vm2, %v739_v29 }
 0x414   : > { %v448_v30 = vpop.f32.mrf.mxu0 }
 0x416   : > { %v1023_v31 = vpop.f32.mrf.mxu0 }
 0x418   : > { %v451_v32 = vpop.f32.mrf.mxu0 }
 0x41a   : > { %v1024_v33 = vpop.f32.mrf.mxu0 }
 0x41c   : > { %v560_v34 = vpop.f32.mrf.mxu0 }
 0x41d   : > { %789 = vrot.lane.b32.xlu1 %v560_v34, %s1136_s26 }
 0x41e   : > { %v1035_v35 = vpop.f32.mrf.mxu0 }
 0x420   : > { %v563_v36 = vpop.f32.mrf.mxu0 }
 0x422   : > { %v1036_v37 = vpop.f32.mrf.mxu0 }
 0x441   : > { %v671_v40 = vpop.f32.mrf.mxu0 }
 0x442   : > { %793 = vrot.lane.b32.xlu0 %v671_v40, %s1137_s9 }
 0x443   : > { %v1047_v41 = vpop.f32.mrf.mxu0 }
 0x445   : > { %v674_v42 = vpop.f32.mrf.mxu0 }
 0x447   : > { %v1048_v43 = vpop.f32.mrf.mxu0 }
 0x44b   : > { %v782_v44 = vpop.f32.mrf.mxu0 }
 0x44c   : > { %797 = vrot.lane.b32.xlu1 %v782_v44, %s1138_s10 }
 0x44d   : > { %v1059_v45 = vpop.f32.mrf.mxu0 }
 0x44f   : > { %v785_v46 = vpop.f32.mrf.mxu0 }
 0x451   : > { %v1060_v47 = vpop.f32.mrf.mxu0 }
 0x48f   : > { %v790_v48 = vpop.permute.xlu1 %789 }
 0x490   : > { %v800_v49 = vsel %vm344_vm2, %v448_v30, %v790_v48 }
 0x4b4   : > { %v794_v1 = vpop.permute.xlu0 %793 }
 0x4b5   : > { %v802_v50 = vsel %vm801_vm5, %v800_v49, %v794_v1 }
 0x4be   : > { %v798_v51 = vpop.permute.xlu1 %797 }
 0x4bf   : > { %v804_v52 = vsel %vm803_vm6, %v802_v50, %v798_v51 }
 0x4c0   : > { %v805_v53 = vpack.c.bf16 %v804_v52, %v804_v52 }
 0x4c2   : > { %1066 = vmatmul.mubr.msk.bf16.vlgmr.msra.gmra.mxu1 %vm294_vm1, %v805_v53 }
 0x582   : > { %v866_v55 = vpop.f32.mrf.mxu1 }
 0x583   : > { %v867_v56 = vadd.f32 %v975_v54, %v866_v55 }
 0x584   : > { %v1067_v57 = vpop.f32.mrf.mxu1 }
 0x585   : > { %v872_v58 = vadd.f32 %v867_v56, %v1209_v3  ;;  %v979_v3 = vld [vmem:[%s1312_s4] ss:$0 sm:$0xff] }
 0x586   : > { %v869_v59 = vpop.f32.mrf.mxu1 }
 0x587   : > { %v875_v60 = vsel %vm294_vm1, %v872_v58, 0.0 }
 0x588   : > { %876 = vadd.xlane.f32.xlu0 %v875_v60  ;;  %v1068_v61 = vpop.f32.mrf.mxu1 }
 0x611   : > { %v877_v62 = vpop.xlane.xlu0 %876 }
 0x612   : > { %v879_v63 = vmul.f32 0.03125, %v877_v62 }
 0x614   : > { %v880_v0 = vsub.f32 %v872_v58, %v879_v63 }
 0x616   : > { %v881_v2 = vmul.f32 %v880_v0, %v880_v0 }
 0x618   : > { %v882_v4 = vsel %vm294_vm1, %v881_v2, 0.0 }
 0x619   : > { %883 = vadd.xlane.f32.xlu1 %v882_v4 }
 0x6a2   : > { %v884_v5 = vpop.xlane.xlu1 %883 }
 0x6a3   : > { %v885_v6 = vmul.f32 0.03125, %v884_v5 }
 0x6a5   : > { %v886_v8 = vadd.f32 1e-05, %v885_v6 }
 0x6a7   : > { %1113 = vrsqrt.f32 %v886_v8 }
 0x6b4   : > { %v1114_v9 = vpop.eup %1113 }
 0x6b5   : > { %v888_v10 = vmul.f32 %v1114_v9, %v880_v0 }
 0x6b7   : > { %v895_v12 = vmul.f32 %v979_v3, %v888_v10 }
 0x6b9   : > { %v902_v13 = vadd.f32 %v980_v11, %v895_v12 }
 0x6bb   : > { %903 = vst.msk [vmem:[%s273_s19] sm:$0xff] %vm294_vm1, %v902_v13 }
 0x6bc PF: > { %s17_s24 = sadd.s32 1, %s1121_s24  }
 0x6bd   : > { %p14_p4 = scmp.ge.s32.totalorder %s17_s24, 4  }
 0x6bf   :  { %16 = sbr.rel (!%p14_p4) target bundleno = 1 (0x1), region = 78 }

// kernel: transformer_forward.11
= control target key start
LH: loop header
LB: loop body
LE: loop exit
PB: predicated region body
PF: predicated region fallthrough
CT: control target
= control target key end

     0   :  { %s1141_s21 = smov 0   ;;  %s1263_s0 = inlined_call_operand.vmem [shape: f32[2,8,32], index: 0, kind: input, shape index: {}]   ;;  %s1264_s1 = inlined_call_operand.vmem [shape: bf16[32,96], index: 1, kind: input, shape index: {}]   ;;  %s1265_s2 = inlined_call_operand.vmem [shape: bf16[32,32], index: 2, kind: input, shape index: {}]   ;;  %s1266_s3 = inlined_call_operand.vmem [shape: f32[1,32], index: 3, kind: input, shape index: {}]   ;;  %s1267_s4 = inlined_call_operand.vmem [shape: f32[1,32], index: 4, kind: input, shape index: {}]   ;;  %s1268_s5 = inlined_call_operand.vmem [shape: f32[1,32], index: 5, kind: input, shape index: {}]   ;;  %s1269_s6 = inlined_call_operand.vmem [shape: f32[2,8,32], index: 6, kind: output, shape index: {}]  }
   0x1 LB: > { %s924_s22 = sadd.s32 4294967295, %s1088_s21   ;;  %p928_p0 = scmp.ge.s32.totalorder %s1088_s21, 1  ;;  %s1088_s21 = sphi %s1141_s21, %s16_s21  }
   0x2   : > { %p211_p1 = scmp.lt.s32.totalorder %s1088_s21, 3 }
   0x4   : > { %p212_p2 = pnand %p928_p0, %p211_p1 }
   0x5   : > { %p239_p3 = scmp.lt.s32.totalorder (!%p212_p2), %s924_s22, 1  ;;  %s1092_s7 = smov (!%p212_p2), 96  }
   0x6   : > { %215 = sbr.rel (%p212_p2) target bundleno = 1723 (0x6bb), region = 44  ;;  %s1093_s8 = smov (!%p212_p2), 120  }
   0x7   : > { %s1094_s9 = smov (!%p212_p2), 88   ;;  %s1095_s10 = smov (!%p212_p2), 80  }
   0x8   : > { %s1096_s11 = smov (!%p212_p2), 112   ;;  %s1097_s12 = smov (!%p212_p2), 72  }
   0x9   : > { %s1098_s13 = smov (!%p212_p2), 104   ;;  %s1099_s14 = smov (!%p212_p2), 56  }
   0xa   : > { %s1100_s15 = smov (!%p212_p2), 64   ;;  %s1101_s16 = smov (!%p212_p2), 40  }
   0xb   : > { %v1060_v0 = vld [vmem:[%s1264_s1 + $0x8] sm:$0xff]   ;;  %v1090_v1 = vmov 0.0   ;;  %v1061_v2 = vld [vmem:[%s1264_s1] sm:$0xff]   ;;  %vm1091_vm0 = vmmov 0   ;;  %s1271_s22 = smov (!%p239_p3, %s924_s22), 1  ;;  %vm266_vm1 = vcmask 261120  }
   0xc   : > { %972 = vmatprep.subr.bf16.mxu0 %v1090_v1  ;;  %980 = vmatprep.subr.bf16.mxu1 %v1090_v1  ;;  %s929_s27 = sshll.u32 %s1271_s22, 3  ;;  %vm316_vm2 = vcmask 64512   ;;  %s1102_s17 = smov 48   ;;  %vm380_vm3 = vcmask 1043456   ;;  %vm768_vm4 = vcmask 130048   ;;  %vm770_vm5 = vcmask 195584  }
   0xd   : > { %973 = vmatpush3.bf16.msra.mxu0 %v1060_v0  ;;  %976 = vmatprep.mubr.msk.bf16.mxu0 %vm1091_vm0, %v1090_v1  ;;  %s242_s30 = scalar_lea.vmem %s1263_s0, %s929_s27  ;;  %s1103_s18 = smov 8  }
   0xe   : > { %974 = vmatprep.subr.bf16.mxu0 %v1090_v1  ;;  %982 = vmatprep.mubr.msk.bf16.mxu1 %vm1091_vm0, %v1090_v1  ;;  %v1171_v3 = vld [vmem:[%s242_s30] sm:$0xff]  ;;  %s1104_s25 = smov 16   ;;  %s1105_s26 = smov 24  }
   0xf   : > { %v249_v4 = vpack.c.bf16 %v1171_v3, %v1171_v3 }
  0x11   : > { %975 = vmatpush3.bf16.msra.mxu0 %v1061_v2 }
  0x12   : > { %986 = vmatprep.subr.bf16.mxu0 %v1090_v1 }
  0x14   : > { %977 = vmatmul.mubr.msk.bf16.vlgmr.msra.gmra.mxu0 %vm266_vm1, %v249_v4 }
  0x15   : > { %988 = vmatprep.mubr.msk.bf16.mxu0 %vm1091_vm0, %v1090_v1 }
  0xd4   : > { %v304_v5 = vpop.f32.mrf.mxu0 }
  0xd5   : > { %v310_v6 = vmul.f32 0.35355338, %v304_v5  ;;  %v1178_v7 = vpack.c.bf16 %v304_v5, %v304_v5 }
  0xd6   : > { %v978_v8 = vpop.f32.mrf.mxu0 }
  0xd7   : > { %v311_v9 = vpack.c.bf16 %v310_v6, %v310_v6  ;;  %314 = vrot.lane.b32.xlu0 %v1178_v7, %s1092_s7 }
  0xd8   : > { %v307_v10 = vpop.f32.mrf.mxu0 }
  0xd9   : > { %425 = vrot.lane.b32.xlu1 %v311_v9, %s1093_s8 }
  0xda   : > { %v979_v11 = vpop.f32.mrf.mxu0 }
  0xdb   : > { %427 = vrot.lane.b32.xlu0 %v1178_v7, %s1094_s9 }
  0xdd   : > { %537 = vrot.lane.b32.xlu1 %v1178_v7, %s1095_s10 }
  0xdf   : > { %535 = vrot.lane.b32.xlu0 %v311_v9, %s1096_s11 }
  0xe1   : > { %647 = vrot.lane.b32.xlu1 %v1178_v7, %s1097_s12  ;;  %s246_s12 = scalar_lea.vmem %s1269_s6, %s929_s27 }
  0xe3   : > { %645 = vrot.lane.b32.xlu0 %v311_v9, %s1098_s13 }
 0x149   : > { %v315_v12 = vpop.permute.xlu0 %314 }
 0x14a   : > { %v321_v13 = vsel %vm316_vm2, %v315_v12, 0 }
 0x14b   : > { %981 = vmatpush3.bf16.xpose.msra.mxu1 %v321_v13  ;;  %v426_v15 = vpop.permute.xlu1 %425 }
 0x14c   : > { %992 = vmatprep.subr.bf16.mxu1 %v1090_v1 }
 0x14d   : > { %v428_v14 = vpop.permute.xlu0 %427 }
 0x14e   : > { %v433_v16 = vsel %vm316_vm2, %v428_v14, 0 }
 0x14f   : > { %v538_v17 = vpop.permute.xlu1 %537 }
 0x150   : > { %v543_v18 = vsel %vm316_vm2, %v538_v17, 0 }
 0x151   : > { %v536_v20 = vpop.permute.xlu0 %535 }
 0x152   : > { %983 = vmatmul.mubr.msk.bf16.vlgmr.msra.gmra.mxu1 %vm316_vm2, %v311_v9 }
 0x153   : > { %993 = vmatpush3.bf16.xpose.msra.mxu1 %v433_v16  ;;  %994 = vmatprep.mubr.msk.bf16.mxu1 %vm1091_vm0, %v1090_v1  ;;  %v648_v19 = vpop.permute.xlu1 %647 }
 0x154   : > { %1004 = vmatprep.subr.bf16.mxu1 %v1090_v1  ;;  %v653_v21 = vsel %vm316_vm2, %v648_v19, 0 }
 0x155   : > { %v646_v22 = vpop.permute.xlu0 %645 }
 0x15a   : > { %995 = vmatmul.mubr.msk.bf16.vlgmr.msra.gmra.mxu1 %vm316_vm2, %v426_v15 }
 0x15b   : > { %1005 = vmatpush3.bf16.xpose.msra.mxu1 %v543_v18  ;;  %1006 = vmatprep.mubr.msk.bf16.mxu1 %vm1091_vm0, %v1090_v1 }
 0x15c   : > { %1016 = vmatprep.subr.bf16.mxu1 %v1090_v1 }
 0x162   : > { %1007 = vmatmul.mubr.msk.bf16.vlgmr.msra.gmra.mxu1 %vm316_vm2, %v536_v20 }
 0x163   : > { %1017 = vmatpush3.bf16.xpose.msra.mxu1 %v653_v21  ;;  %1018 = vmatprep.mubr.msk.bf16.mxu1 %vm1091_vm0, %v1090_v1 }
 0x164   : > { %1028 = vmatprep.subr.bf16.mxu1 %v1090_v1 }
 0x16a   : > { %1019 = vmatmul.mubr.msk.bf16.vlgmr.msra.gmra.mxu1 %vm316_vm2, %v646_v22 }
 0x16b   : > { %1032 = vmatprep.mubr.msk.bf16.mxu1 %vm1091_vm0, %v1090_v1 }
 0x212   : > { %v357_v23 = vpop.f32.mrf.mxu1 }
 0x213   : > { %v363_v24 = vsel %vm316_vm2, %v357_v23, -inf }
 0x214   : > { %364 = vmax.xlane.f32.xlu1 %v363_v24  ;;  %v984_v25 = vpop.f32.mrf.mxu1 }
 0x216   : > { %v360_v26 = vpop.f32.mrf.mxu1 }
 0x218   : > { %v985_v27 = vpop.f32.mrf.mxu1 }
 0x21a   : > { %v469_v28 = vpop.f32.mrf.mxu1 }
 0x21b   : > { %v475_v29 = vsel %vm316_vm2, %v469_v28, -inf }
 0x21c   : > { %476 = vmax.xlane.f32.xlu0 %v475_v29  ;;  %v996_v30 = vpop.f32.mrf.mxu1 }
 0x21e   : > { %v472_v31 = vpop.f32.mrf.mxu1 }
 0x220   : > { %v997_v32 = vpop.f32.mrf.mxu1 }
 0x222   : > { %v579_v33 = vpop.f32.mrf.mxu1 }
 0x223   : > { %v585_v34 = vsel %vm316_vm2, %v579_v33, -inf }
 0x224   : > { %586 = vmax.xlane.f32.xlu0 %v585_v34  ;;  %v1008_v35 = vpop.f32.mrf.mxu1  ;;  %v1063_v34 = vld [vmem:[%s1265_s2] sm:$0xff]  }
 0x226   : > { %v582_v36 = vpop.f32.mrf.mxu1 }
 0x228   : > { %v1009_v37 = vpop.f32.mrf.mxu1 }
 0x22a   : > { %v689_v38 = vpop.f32.mrf.mxu1 }
 0x22b   : > { %v695_v39 = vsel %vm316_vm2, %v689_v38, -inf }
 0x22c   : > { %696 = vmax.xlane.f32.xlu1 %v695_v39  ;;  %v1020_v40 = vpop.f32.mrf.mxu1 }
 0x22e   : > { %v692_v41 = vpop.f32.mrf.mxu1 }
 0x230   : > { %v1021_v42 = vpop.f32.mrf.mxu1 }
 0x29d   : > { %v365_v43 = vpop.xlane.xlu1 %364 }
 0x29e   : > { %v366_v44 = vsub.f32 %v357_v23, %v365_v43 }
 0x2a0   : > { %v367_v45 = vmul.f32 1.442695, %v366_v44 }
 0x2a2   : > { %1064 = vpow2.f32 %v367_v45 }
 0x2a5   : > { %v477_v46 = vpop.xlane.xlu0 %476 }
 0x2a6   : > { %v478_v47 = vsub.f32 %v469_v28, %v477_v46 }
 0x2a8   : > { %v479_v48 = vmul.f32 1.442695, %v478_v47 }
 0x2aa   : > { %1066 = vpow2.f32 %v479_v48 }
 0x2ad   : > { %v587_v49 = vpop.xlane.xlu0 %586 }
 0x2ae   : > { %v588_v50 = vsub.f32 %v579_v33, %v587_v49  ;;  %v1062_v33 = vld [vmem:[%s1265_s2 + $0x8] sm:$0xff]   ;;  %v942_v49 = vld [vmem:[%s1266_s3] ss:$0 sm:$0xff] }
 0x2af   : > { %v1065_v51 = vpop.eup %1064  ;;  %1029 = vmatpush3.bf16.msra.mxu1 %v1062_v33 }
 0x2b0   : > { %v589_v52 = vmul.f32 1.442695, %v588_v50  ;;  %v369_v53 = vsel %vm316_vm2, %v1065_v51, 0.0  ;;  %1030 = vmatprep.subr.bf16.mxu1 %v1090_v1 }
 0x2b1   : > { %370 = vadd.xlane.f32.xlu0 %v369_v53 }
 0x2b2   : > { %1068 = vpow2.f32 %v589_v52 }
 0x2b3   : > { %1031 = vmatpush3.bf16.msra.mxu1 %v1063_v34 }
 0x2b5   : > { %v697_v58 = vpop.xlane.xlu1 %696 }
 0x2b6   : > { %v698_v59 = vsub.f32 %v689_v38, %v697_v58 }
 0x2b7   : > { %v1067_v54 = vpop.eup %1066 }
 0x2b8   : > { %v481_v55 = vsel %vm316_vm2, %v1067_v54, 0.0  ;;  %v699_v60 = vmul.f32 1.442695, %v698_v59 }
 0x2b9   : > { %482 = vadd.xlane.f32.xlu1 %v481_v55 }
 0x2ba   : > { %1070 = vpow2.f32 %v699_v60 }
 0x2bf   : > { %v1069_v56 = vpop.eup %1068 }
 0x2c0   : > { %v591_v57 = vsel %vm316_vm2, %v1069_v56, 0.0 }
 0x2c1   : > { %592 = vadd.xlane.f32.xlu0 %v591_v57 }
 0x2c7   : > { %v1071_v61 = vpop.eup %1070 }
 0x2c8   : > { %v701_v62 = vsel %vm316_vm2, %v1071_v61, 0.0 }
 0x2ca   : > { %487 = vrot.lane.b32.xlu1 %v1178_v7, %s1099_s14 }
 0x2d7   : > { %375 = vrot.lane.b32.xlu0 %v1178_v7, %s1100_s15 }
 0x2db   : > { %707 = vrot.lane.b32.xlu0 %v1178_v7, %s1101_s16 }
 0x2ee   : > { %702 = vadd.xlane.f32.xlu1 %v701_v62 }
 0x2ff   : > { %597 = vrot.lane.b32.xlu1 %v1178_v7, %s1102_s17 }
 0x33a   : > { %v371_v63 = vpop.xlane.xlu0 %370 }
 0x33b   : > { %1072 = vrcp.f32 %v371_v63 }
 0x342   : > { %v483_v0 = vpop.xlane.xlu1 %482 }
 0x343   : > { %1074 = vrcp.f32 %v483_v0 }
 0x346   : > { %v488_v9 = vpop.permute.xlu1 %487 }
 0x347   : > { %v493_v12 = vsel %vm380_vm3, %v488_v9, 0 }
 0x348   : > { %v1073_v2 = vpop.eup %1072 }
 0x349   : > { %v373_v5 = vmul.f32 %v1073_v2, %v1065_v51 }
 0x34a   : > { %v593_v4 = vpop.xlane.xlu0 %592 }
 0x34b   : > { %v374_v10 = vpack.c.bf16 %v373_v5, %v373_v5  ;;  %1076 = vrcp.f32 %v593_v4  ;;  %v947_v5 = vld [vmem:[%s1268_s5] ss:$0 sm:$0xff] }
 0x34e   : > { %v376_v6 = vpop.permute.xlu0 %375 }
 0x34f   : > { %v382_v8 = vsel %vm380_vm3, %v376_v6, 0 }
 0x350   : > { %987 = vmatpush3.bf16.msra.mxu0 %v382_v8  ;;  %v1075_v11 = vpop.eup %1074 }
 0x351   : > { %998 = vmatprep.subr.bf16.mxu0 %v1090_v1  ;;  %v485_v7 = vmul.f32 %v1075_v11, %v1067_v54 }
 0x352   : > { %v708_v19 = vpop.permute.xlu0 %707 }
 0x353   : > { %989 = vmatmul.mubr.msk.bf16.vlgmr.msra.gmra.mxu0 %vm316_vm2, %v374_v10  ;;  %v486_v13 = vpack.c.bf16 %v485_v7, %v485_v7  ;;  %v713_v21 = vsel %vm380_vm3, %v708_v19, 0 }
 0x354   : > { %999 = vmatpush3.bf16.msra.mxu0 %v493_v12  ;;  %1000 = vmatprep.mubr.msk.bf16.mxu0 %vm1091_vm0, %v1090_v1 }
 0x355   : > { %1010 = vmatprep.subr.bf16.mxu0 %v1090_v1 }
 0x358   : > { %v1077_v14 = vpop.eup %1076 }
 0x359   : > { %v595_v16 = vmul.f32 %v1077_v14, %v1069_v56 }
 0x35b   : > { %1001 = vmatmul.mubr.msk.bf16.vlgmr.msra.gmra.mxu0 %vm316_vm2, %v486_v13  ;;  %v596_v20 = vpack.c.bf16 %v595_v16, %v595_v16 }
 0x35c   : > { %1012 = vmatprep.mubr.msk.bf16.mxu0 %vm1091_vm0, %v1090_v1 }
 0x377   : > { %v703_v15 = vpop.xlane.xlu1 %702 }
 0x378   : > { %1078 = vrcp.f32 %v703_v15 }
 0x37b   : > { %v598_v17 = vpop.permute.xlu1 %597 }
 0x37c   : > { %v603_v18 = vsel %vm380_vm3, %v598_v17, 0 }
 0x37d   : > { %1011 = vmatpush3.bf16.msra.mxu0 %v603_v18 }
 0x37e   : > { %1022 = vmatprep.subr.bf16.mxu0 %v1090_v1 }
 0x380   : > { %1013 = vmatmul.mubr.msk.bf16.vlgmr.msra.gmra.mxu0 %vm316_vm2, %v596_v20 }
 0x381   : > { %1023 = vmatpush3.bf16.msra.mxu0 %v713_v21  ;;  %1024 = vmatprep.mubr.msk.bf16.mxu0 %vm1091_vm0, %v1090_v1 }
 0x385   : > { %v1079_v22 = vpop.eup %1078 }
 0x386   : > { %v705_v23 = vmul.f32 %v1079_v22, %v1071_v61 }
 0x388   : > { %v706_v24 = vpack.c.bf16 %v705_v23, %v705_v23 }
 0x38a   : > { %1025 = vmatmul.mubr.msk.bf16.vlgmr.msra.gmra.mxu0 %vm316_vm2, %v706_v24 }
 0x413   : > { %v418_v25 = vpop.f32.mrf.mxu0 }
 0x415   : > { %v990_v26 = vpop.f32.mrf.mxu0 }
 0x417   : > { %v421_v27 = vpop.f32.mrf.mxu0 }
 0x419   : > { %v991_v28 = vpop.f32.mrf.mxu0 }
 0x41b   : > { %v529_v29 = vpop.f32.mrf.mxu0 }
 0x41c   : > { %756 = vrot.lane.b32.xlu1 %v529_v29, %s1103_s18 }
 0x41d   : > { %v1002_v30 = vpop.f32.mrf.mxu0 }
 0x41f   : > { %v532_v31 = vpop.f32.mrf.mxu0 }
 0x421   : > { %v1003_v32 = vpop.f32.mrf.mxu0 }
 0x440   : > { %v639_v35 = vpop.f32.mrf.mxu0 }
 0x441   : > { %760 = vrot.lane.b32.xlu0 %v639_v35, %s1104_s25 }
 0x442   : > { %v1014_v36 = vpop.f32.mrf.mxu0 }
 0x444   : > { %v642_v37 = vpop.f32.mrf.mxu0 }
 0x446   : > { %v1015_v38 = vpop.f32.mrf.mxu0 }
 0x44a   : > { %v749_v39 = vpop.f32.mrf.mxu0 }
 0x44b   : > { %764 = vrot.lane.b32.xlu1 %v749_v39, %s1105_s26 }
 0x44c   : > { %v1026_v40 = vpop.f32.mrf.mxu0 }
 0x44e   : > { %v752_v41 = vpop.f32.mrf.mxu0 }
 0x450   : > { %v1027_v42 = vpop.f32.mrf.mxu0 }
 0x48e   : > { %v757_v43 = vpop.permute.xlu1 %756 }
 0x48f   : > { %v767_v44 = vsel %vm316_vm2, %v418_v25, %v757_v43 }
 0x4b3   : > { %v761_v1 = vpop.permute.xlu0 %760 }
 0x4b4   : > { %v769_v45 = vsel %vm768_vm4, %v767_v44, %v761_v1 }
 0x4bd   : > { %v765_v46 = vpop.permute.xlu1 %764 }
 0x4be   : > { %v771_v47 = vsel %vm770_vm5, %v769_v45, %v765_v46 }
 0x4bf   : > { %v772_v48 = vpack.c.bf16 %v771_v47, %v771_v47 }
 0x4c1   : > { %1033 = vmatmul.mubr.msk.bf16.vlgmr.msra.gmra.mxu1 %vm266_vm1, %v772_v48 }
 0x581   : > { %v833_v50 = vpop.f32.mrf.mxu1 }
 0x582   : > { %v834_v51 = vadd.f32 %v942_v49, %v833_v50 }
 0x583   : > { %v1034_v52 = vpop.f32.mrf.mxu1 }
 0x584   : > { %v839_v53 = vadd.f32 %v834_v51, %v1171_v3  ;;  %v946_v3 = vld [vmem:[%s1267_s4] ss:$0 sm:$0xff] }
 0x585   : > { %v836_v54 = vpop.f32.mrf.mxu1 }
 0x586   : > { %v842_v55 = vsel %vm266_vm1, %v839_v53, 0.0 }
 0x587   : > { %843 = vadd.xlane.f32.xlu0 %v842_v55  ;;  %v1035_v56 = vpop.f32.mrf.mxu1 }
 0x610   : > { %v844_v57 = vpop.xlane.xlu0 %843 }
 0x611   : > { %v846_v58 = vmul.f32 0.03125, %v844_v57 }
 0x613   : > { %v847_v59 = vsub.f32 %v839_v53, %v846_v58 }
 0x615   : > { %v848_v60 = vmul.f32 %v847_v59, %v847_v59 }
 0x617   : > { %v849_v61 = vsel %vm266_vm1, %v848_v60, 0.0 }
 0x618   : > { %850 = vadd.xlane.f32.xlu1 %v849_v61 }
 0x6a1   : > { %v851_v62 = vpop.xlane.xlu1 %850 }
 0x6a2   : > { %v852_v63 = vmul.f32 0.03125, %v851_v62 }
 0x6a4   : > { %v853_v0 = vadd.f32 1e-05, %v852_v63 }
 0x6a6   : > { %1080 = vrsqrt.f32 %v853_v0 }
 0x6b3   : > { %v1081_v2 = vpop.eup %1080 }
 0x6b4   : > { %v855_v4 = vmul.f32 %v1081_v2, %v847_v59 }
 0x6b6   : > { %v862_v6 = vmul.f32 %v946_v3, %v855_v4 }
 0x6b8   : > { %v869_v8 = vadd.f32 %v947_v5, %v862_v6 }
 0x6ba   : > { %870 = vst.msk [vmem:[%s246_s12] sm:$0xff] %vm266_vm1, %v869_v8 }
 0x6bb PF: > { %s16_s21 = sadd.s32 1, %s1088_s21  }
 0x6bc   : > { %p13_p4 = scmp.ge.s32.totalorder %s16_s21, 4  }
 0x6be   :  { %15 = sbr.rel (!%p13_p4) target bundleno = 1 (0x1), region = 74 }

// kernel: transformer_forward.16
= control target key start
LH: loop header
LB: loop body
LE: loop exit
PB: predicated region body
PF: predicated region fallthrough
CT: control target
= control target key end

     0   :  { %s1465_s13 = smov 0   ;;  %s1613_s0 = inlined_call_operand.vmem [shape: f32[2,8,32], index: 0, kind: input, shape index: {}]   ;;  %s1614_s1 = inlined_call_operand.vmem [shape: f32[2,8,32], index: 1, kind: input, shape index: {}]   ;;  %s1615_s2 = inlined_call_operand.vmem [shape: f32[2,8,32], index: 2, kind: input, shape index: {}]   ;;  %s1616_s3 = inlined_call_operand.vmem [shape: bf16[32,32], index: 3, kind: input, shape index: {}]   ;;  %s1617_s4 = inlined_call_operand.vmem [shape: bf16[32,32], index: 4, kind: input, shape index: {}]   ;;  %s1618_s5 = inlined_call_operand.vmem [shape: bf16[32,32], index: 5, kind: input, shape index: {}]   ;;  %s1619_s6 = inlined_call_operand.vmem [shape: bf16[32,32], index: 6, kind: input, shape index: {}]   ;;  %s1620_s7 = inlined_call_operand.vmem [shape: f32[1,32], index: 7, kind: input, shape index: {}]   ;;  %s1621_s8 = inlined_call_operand.vmem [shape: f32[1,32], index: 8, kind: input, shape index: {}]   ;;  %s1622_s9 = inlined_call_operand.vmem [shape: f32[1,32], index: 9, kind: input, shape index: {}]   ;;  %s1623_s10 = inlined_call_operand.vmem [shape: f32[2,8,32], index: 10, kind: output, shape index: {}]  }
   0x1 LB: > { %s1210_s14 = sadd.s32 4294967295, %s1400_s13   ;;  %p1214_p0 = scmp.ge.s32.totalorder %s1400_s13, 1  ;;  %s1400_s13 = sphi %s1465_s13, %s20_s13  }
   0x2   : > { %p329_p1 = scmp.lt.s32.totalorder %s1400_s13, 3 }
   0x4   : > { %p330_p2 = pnand %p1214_p0, %p329_p1 }
   0x5   : > { %p373_p3 = scmp.lt.s32.totalorder (!%p330_p2), %s1210_s14, 1  ;;  %s1404_s30 = smov (!%p330_p2), 112  }
   0x6   : > { %333 = sbr.rel (%p330_p2) target bundleno = 1679 (0x68f), region = 60  ;;  %s1405_s11 = smov (!%p330_p2), 120  }
   0x7   : > { %s1406_s12 = smov (!%p330_p2), 104   ;;  %s1407_s24 = smov (!%p330_p2), 8  }
   0x8   : > { %s1408_s27 = smov (!%p330_p2), 16   ;;  %s1409_s28 = smov (!%p330_p2), 24  }
   0xb   : > { %v1368_v0 = vld [vmem:[%s1616_s3 + $0x8] sm:$0xff]   ;;  %v1402_v1 = vmov 0.0   ;;  %v1370_v3 = vld [vmem:[%s1616_s3] sm:$0xff]   ;;  %vm1403_vm0 = vmmov 0   ;;  %s1625_s14 = smov (!%p373_p3, %s1210_s14), 1  ;;  %vm409_vm1 = vcmask 261120  }
   0xc   : > { %1272 = vmatprep.subr.bf16.mxu0 %v1402_v1  ;;  %1280 = vmatprep.subr.bf16.mxu1 %v1402_v1  ;;  %v1369_v2 = vld [vmem:[%s1617_s4 + $0x8] sm:$0xff]   ;;  %v1371_v4 = vld [vmem:[%s1617_s4] sm:$0xff]   ;;  %s1493_s23 = sshll.u32 %s1625_s14, 3  ;;  %vm578_vm2 = vcmask 64512   ;;  %vm640_vm3 = vcmask 1043456   ;;  %vm1030_vm4 = vcmask 130048  }
   0xd   : > { %1273 = vmatpush3.bf16.msra.mxu0 %v1368_v0  ;;  %1276 = vmatprep.mubr.msk.bf16.mxu0 %vm1403_vm0, %v1402_v1  ;;  %s376_s26 = scalar_lea.vmem %s1613_s0, %s1493_s23  ;;  %s380_s29 = scalar_lea.vmem %s1614_s1, %s1493_s23  ;;  %v1372_v21 = vld [vmem:[%s1618_s5 + $0x8] sm:$0xff]   ;;  %v1373_v22 = vld [vmem:[%s1618_s5] sm:$0xff]   ;;  %vm1032_vm5 = vcmask 195584  }
   0xe   : > { %1281 = vmatpush3.bf16.msra.mxu1 %v1369_v2  ;;  %1274 = vmatprep.subr.bf16.mxu0 %v1402_v1  ;;  %v391_v5 = vld [vmem:[%s376_s26] sm:$0xff]  ;;  %s384_s18 = scalar_lea.vmem %s1615_s2, %s1493_s23 }
   0xf   : > { %1282 = vmatprep.subr.bf16.mxu1 %v1402_v1  ;;  %1284 = vmatprep.mubr.msk.bf16.mxu1 %vm1403_vm0, %v1402_v1  ;;  %v392_v6 = vpack.c.bf16 %v391_v5, %v391_v5  ;;  %v454_v7 = vld [vmem:[%s380_s29] sm:$0xff] }
  0x10   : > { %v455_v8 = vpack.c.bf16 %v454_v7, %v454_v7  ;;  %v1532_v23 = vld [vmem:[%s384_s18] sm:$0xff]  ;;  %s388_s18 = scalar_lea.vmem %s1623_s10, %s1493_s23 }
  0x11   : > { %1275 = vmatpush3.bf16.msra.mxu0 %v1370_v3  ;;  %v515_v24 = vpack.c.bf16 %v1532_v23, %v1532_v23 }
  0x12   : > { %1283 = vmatpush3.bf16.msra.mxu1 %v1371_v4  ;;  %1288 = vmatprep.subr.bf16.mxu0 %v1402_v1 }
  0x13   : > { %1296 = vmatprep.subr.bf16.mxu1 %v1402_v1 }
  0x14   : > { %1277 = vmatmul.mubr.msk.bf16.vlgmr.msra.gmra.mxu0 %vm409_vm1, %v392_v6 }
  0x15   : > { %1285 = vmatmul.mubr.msk.bf16.vlgmr.msra.gmra.mxu1 %vm409_vm1, %v455_v8  ;;  %1292 = vmatprep.mubr.msk.bf16.mxu0 %vm1403_vm0, %v1402_v1 }
  0x16   : > { %1298 = vmatprep.mubr.msk.bf16.mxu1 %vm1403_vm0, %v1402_v1  ;;  %1289 = vmatpush3.bf16.msra.mxu0 %v1372_v21 }
  0x17   : > { %1290 = vmatprep.subr.bf16.mxu0 %v1402_v1 }
  0x1a   : > { %1291 = vmatpush3.bf16.msra.mxu0 %v1373_v22 }
  0x1b   : > { %1302 = vmatprep.subr.bf16.mxu0 %v1402_v1 }
  0x1d   : > { %1293 = vmatmul.mubr.msk.bf16.vlgmr.msra.gmra.mxu0 %vm409_vm1, %v515_v24 }
  0x1e   : > { %1304 = vmatprep.mubr.msk.bf16.mxu0 %vm1403_vm0, %v1402_v1 }
  0xd4   : > { %v447_v9 = vpop.f32.mrf.mxu0 }
  0xd5   : > { %v453_v10 = vmul.f32 0.35355338, %v447_v9  ;;  %v509_v11 = vpop.f32.mrf.mxu1 }
  0xd6   : > { %v576_v12 = vpack.c.bf16 %v509_v11, %v509_v11  ;;  %v1278_v13 = vpop.f32.mrf.mxu0 }
  0xd7   : > { %v1286_v14 = vpop.f32.mrf.mxu1  ;;  %v575_v15 = vpack.c.bf16 %v453_v10, %v453_v10 }
  0xd8   : > { %799 = vrot.lane.b32.xlu1 %v576_v12, %s1404_s30  ;;  %688 = vrot.lane.b32.xlu0 %v576_v12, %s1405_s11  ;;  %v450_v16 = vpop.f32.mrf.mxu0  ;;  %v583_v17 = vsel %vm578_vm2, %v576_v12, 0 }
  0xd9   : > { %v512_v18 = vpop.f32.mrf.mxu1  ;;  %1297 = vmatpush3.bf16.xpose.msra.mxu1 %v583_v17 }
  0xda   : > { %v1279_v19 = vpop.f32.mrf.mxu0  ;;  %1308 = vmatprep.subr.bf16.mxu1 %v1402_v1 }
  0xdb   : > { %v1287_v20 = vpop.f32.mrf.mxu1 }
  0xdc   : > { %797 = vrot.lane.b32.xlu1 %v575_v15, %s1404_s30  ;;  %685 = vrot.lane.b32.xlu0 %v575_v15, %s1405_s11 }
  0xdd   : > { %v569_v39 = vpop.f32.mrf.mxu0 }
  0xde   : > { %v577_v40 = vpack.c.bf16 %v569_v39, %v569_v39 }
  0xdf   : > { %v1294_v41 = vpop.f32.mrf.mxu0 }
  0xe0   : > { %907 = vrot.lane.b32.xlu1 %v575_v15, %s1406_s12  ;;  %909 = vrot.lane.b32.xlu0 %v576_v12, %s1406_s12  ;;  %v642_v42 = vsel %vm640_vm3, %v577_v40, 0 }
  0xe1   : > { %1299 = vmatmul.mubr.msk.bf16.vlgmr.msra.gmra.mxu1 %vm578_vm2, %v575_v15  ;;  %v572_v43 = vpop.f32.mrf.mxu0  ;;  %1303 = vmatpush3.bf16.msra.mxu0 %v642_v42 }
  0xe2   : > { %1310 = vmatprep.mubr.msk.bf16.mxu1 %vm1403_vm0, %v1402_v1  ;;  %1314 = vmatprep.subr.bf16.mxu0 %v1402_v1 }
  0xe3   : > { %v1295_v44 = vpop.f32.mrf.mxu0 }
  0xe4   : > { %v1374_v44 = vld [vmem:[%s1619_s6 + $0x8] sm:$0xff]  }
 0x14a   : > { %v689_v25 = vpop.permute.xlu0 %688  ;;  %v800_v27 = vpop.permute.xlu1 %799 }
 0x14b   : > { %v694_v26 = vsel %vm578_vm2, %v689_v25, 0  ;;  %v805_v29 = vsel %vm578_vm2, %v800_v27, 0 }
 0x14c   : > { %1309 = vmatpush3.bf16.xpose.msra.mxu1 %v694_v26 }
 0x14d   : > { %1320 = vmatprep.subr.bf16.mxu1 %v1402_v1 }
 0x14e   : > { %v686_v28 = vpop.permute.xlu0 %685  ;;  %v798_v31 = vpop.permute.xlu1 %797 }
 0x152   : > { %v910_v30 = vpop.permute.xlu0 %909  ;;  %v908_v33 = vpop.permute.xlu1 %907 }
 0x153   : > { %1311 = vmatmul.mubr.msk.bf16.vlgmr.msra.gmra.mxu1 %vm578_vm2, %v686_v28  ;;  %v915_v32 = vsel %vm578_vm2, %v910_v30, 0 }
 0x154   : > { %1321 = vmatpush3.bf16.xpose.msra.mxu1 %v805_v29  ;;  %1322 = vmatprep.mubr.msk.bf16.mxu1 %vm1403_vm0, %v1402_v1 }
 0x155   : > { %1332 = vmatprep.subr.bf16.mxu1 %v1402_v1 }
 0x15b   : > { %1323 = vmatmul.mubr.msk.bf16.vlgmr.msra.gmra.mxu1 %vm578_vm2, %v798_v31 }
 0x15c   : > { %1333 = vmatpush3.bf16.xpose.msra.mxu1 %v915_v32  ;;  %1334 = vmatprep.mubr.msk.bf16.mxu1 %vm1403_vm0, %v1402_v1 }
 0x15d   : > { %1344 = vmatprep.subr.bf16.mxu1 %v1402_v1 }
 0x163   : > { %1335 = vmatmul.mubr.msk.bf16.vlgmr.msra.gmra.mxu1 %vm578_vm2, %v908_v33 }
 0x164   : > { %1348 = vmatprep.mubr.msk.bf16.mxu1 %vm1403_vm0, %v1402_v1  ;;  %1345 = vmatpush3.bf16.msra.mxu1 %v1374_v44 }
 0x165   : > { %1346 = vmatprep.subr.bf16.mxu1 %v1402_v1 }
 0x1a1   : > { %v619_v34 = vpop.f32.mrf.mxu1 }
 0x1a2   : > { %v625_v35 = vsel %vm578_vm2, %v619_v34, -inf }
 0x1a3   : > { %626 = vmax.xlane.f32.xlu0 %v625_v35  ;;  %v1300_v36 = vpop.f32.mrf.mxu1 }
 0x1a5   : > { %v622_v37 = vpop.f32.mrf.mxu1 }
 0x1a7   : > { %v1301_v38 = vpop.f32.mrf.mxu1 }
 0x213   : > { %v730_v45 = vpop.f32.mrf.mxu1 }
 0x214   : > { %v736_v46 = vsel %vm578_vm2, %v730_v45, -inf }
 0x215   : > { %737 = vmax.xlane.f32.xlu1 %v736_v46  ;;  %v1312_v47 = vpop.f32.mrf.mxu1 }
 0x216   : > { %v1375_v47 = vld [vmem:[%s1619_s6] sm:$0xff]  }
 0x217   : > { %v733_v48 = vpop.f32.mrf.mxu1  ;;  %1347 = vmatpush3.bf16.msra.mxu1 %v1375_v47 }
 0x219   : > { %v1313_v49 = vpop.f32.mrf.mxu1 }
 0x21b   : > { %v841_v50 = vpop.f32.mrf.mxu1 }
 0x21c   : > { %v847_v51 = vsel %vm578_vm2, %v841_v50, -inf }
 0x21d   : > { %848 = vmax.xlane.f32.xlu0 %v847_v51  ;;  %v1324_v52 = vpop.f32.mrf.mxu1 }
 0x21f   : > { %v844_v53 = vpop.f32.mrf.mxu1 }
 0x221   : > { %v1325_v54 = vpop.f32.mrf.mxu1 }
 0x223   : > { %v951_v55 = vpop.f32.mrf.mxu1 }
 0x224   : > { %v957_v56 = vsel %vm578_vm2, %v951_v55, -inf }
 0x225   : > { %958 = vmax.xlane.f32.xlu0 %v957_v56  ;;  %v1336_v57 = vpop.f32.mrf.mxu1 }
 0x227   : > { %v954_v58 = vpop.f32.mrf.mxu1 }
 0x229   : > { %v1337_v59 = vpop.f32.mrf.mxu1 }
 0x22c   : > { %v627_v60 = vpop.xlane.xlu0 %626 }
 0x22d   : > { %v628_v61 = vsub.f32 %v619_v34, %v627_v60 }
 0x22f   : > { %v629_v62 = vmul.f32 1.442695, %v628_v61 }
 0x231   : > { %1376 = vpow2.f32 %v629_v62 }
 0x23e   : > { %v1377_v63 = vpop.eup %1376 }
 0x23f   : > { %v631_v0 = vsel %vm578_vm2, %v1377_v63, 0.0 }
 0x240   : > { %632 = vadd.xlane.f32.xlu1 %v631_v0  ;;  %v1236_v0 = vld [vmem:[%s1620_s7] ss:$0 sm:$0xff] }
 0x251   : > { %749 = vrot.lane.b32.xlu1 %v577_v40, %s1405_s11 }
 0x29e   : > { %v738_v2 = vpop.xlane.xlu1 %737 }
 0x29f   : > { %v739_v3 = vsub.f32 %v730_v45, %v738_v2 }
 0x2a1   : > { %v740_v4 = vmul.f32 1.442695, %v739_v3 }
 0x2a3   : > { %1378 = vpow2.f32 %v740_v4 }
 0x2a6   : > { %v849_v5 = vpop.xlane.xlu0 %848 }
 0x2a7   : > { %v850_v6 = vsub.f32 %v841_v50, %v849_v5 }
 0x2a9   : > { %v851_v7 = vmul.f32 1.442695, %v850_v6 }
 0x2ab   : > { %1380 = vpow2.f32 %v851_v7 }
 0x2ae   : > { %v959_v8 = vpop.xlane.xlu0 %958 }
 0x2af   : > { %v960_v9 = vsub.f32 %v951_v55, %v959_v8 }
 0x2b0   : > { %v1379_v10 = vpop.eup %1378 }
 0x2b1   : > { %v961_v11 = vmul.f32 1.442695, %v960_v9  ;;  %v742_v12 = vsel %vm578_vm2, %v1379_v10, 0.0 }
 0x2b2   : > { %743 = vadd.xlane.f32.xlu0 %v742_v12 }
 0x2b3   : > { %1382 = vpow2.f32 %v961_v11 }
 0x2b8   : > { %v1381_v13 = vpop.eup %1380 }
 0x2b9   : > { %v853_v14 = vsel %vm578_vm2, %v1381_v13, 0.0 }
 0x2ba   : > { %854 = vadd.xlane.f32.xlu1 %v853_v14 }
 0x2c0   : > { %v1383_v15 = vpop.eup %1382 }
 0x2c1   : > { %v963_v16 = vsel %vm578_vm2, %v1383_v15, 0.0 }
 0x2c2   : > { %964 = vadd.xlane.f32.xlu0 %v963_v16 }
 0x2c9   : > { %v633_v17 = vpop.xlane.xlu1 %632 }
 0x2ca   : > { %1384 = vrcp.f32 %v633_v17 }
 0x2cb   : > { %969 = vrot.lane.b32.xlu1 %v577_v40, %s1406_s12 }
 0x2cd   : > { %v750_v19 = vpop.permute.xlu1 %749 }
 0x2ce   : > { %v755_v22 = vsel %vm640_vm3, %v750_v19, 0  ;;  %v1241_v19 = vld [vmem:[%s1622_s9] ss:$0 sm:$0xff] }
 0x2d7   : > { %v1385_v18 = vpop.eup %1384 }
 0x2d8   : > { %859 = vrot.lane.b32.xlu0 %v577_v40, %s1404_s30  ;;  %v635_v20 = vmul.f32 %v1385_v18, %v1377_v63 }
 0x2da   : > { %v636_v21 = vpack.c.bf16 %v635_v20, %v635_v20 }
 0x2dc   : > { %1305 = vmatmul.mubr.msk.bf16.vlgmr.msra.gmra.mxu0 %vm578_vm2, %v636_v21 }
 0x2dd   : > { %1315 = vmatpush3.bf16.msra.mxu0 %v755_v22  ;;  %1316 = vmatprep.mubr.msk.bf16.mxu0 %vm1403_vm0, %v1402_v1 }
 0x2de   : > { %1326 = vmatprep.subr.bf16.mxu0 %v1402_v1 }
 0x33b   : > { %v744_v24 = vpop.xlane.xlu0 %743 }
 0x33c   : > { %1386 = vrcp.f32 %v744_v24 }
 0x343   : > { %v855_v25 = vpop.xlane.xlu1 %854 }
 0x344   : > { %1388 = vrcp.f32 %v855_v25 }
 0x347   : > { %v970_v34 = vpop.permute.xlu1 %969 }
 0x348   : > { %v975_v36 = vsel %vm640_vm3, %v970_v34, 0 }
 0x349   : > { %v1387_v26 = vpop.eup %1386 }
 0x34a   : > { %v746_v27 = vmul.f32 %v1387_v26, %v1379_v10 }
 0x34b   : > { %v965_v28 = vpop.xlane.xlu0 %964 }
 0x34c   : > { %1390 = vrcp.f32 %v965_v28  ;;  %v747_v29 = vpack.c.bf16 %v746_v27, %v746_v27 }
 0x34e   : > { %1317 = vmatmul.mubr.msk.bf16.vlgmr.msra.gmra.mxu0 %vm578_vm2, %v747_v29 }
 0x34f   : > { %v860_v30 = vpop.permute.xlu0 %859  ;;  %1328 = vmatprep.mubr.msk.bf16.mxu0 %vm1403_vm0, %v1402_v1 }
 0x350   : > { %v865_v31 = vsel %vm640_vm3, %v860_v30, 0 }
 0x351   : > { %v1389_v32 = vpop.eup %1388  ;;  %1327 = vmatpush3.bf16.msra.mxu0 %v865_v31 }
 0x352   : > { %1338 = vmatprep.subr.bf16.mxu0 %v1402_v1  ;;  %v857_v33 = vmul.f32 %v1389_v32, %v1381_v13 }
 0x354   : > { %v858_v35 = vpack.c.bf16 %v857_v33, %v857_v33 }
 0x356   : > { %1329 = vmatmul.mubr.msk.bf16.vlgmr.msra.gmra.mxu0 %vm578_vm2, %v858_v35 }
 0x357   : > { %1339 = vmatpush3.bf16.msra.mxu0 %v975_v36  ;;  %1340 = vmatprep.mubr.msk.bf16.mxu0 %vm1403_vm0, %v1402_v1 }
 0x359   : > { %v1391_v37 = vpop.eup %1390 }
 0x35a   : > { %v967_v38 = vmul.f32 %v1391_v37, %v1383_v15 }
 0x35c   : > { %v968_v39 = vpack.c.bf16 %v967_v38, %v967_v38 }
 0x35e   : > { %1341 = vmatmul.mubr.msk.bf16.vlgmr.msra.gmra.mxu0 %vm578_vm2, %v968_v39 }
 0x39c   : > { %v678_v40 = vpop.f32.mrf.mxu0 }
 0x39e   : > { %v1306_v41 = vpop.f32.mrf.mxu0 }
 0x3a0   : > { %v681_v42 = vpop.f32.mrf.mxu0 }
 0x3a2   : > { %v1307_v43 = vpop.f32.mrf.mxu0 }
 0x40e   : > { %v791_v45 = vpop.f32.mrf.mxu0 }
 0x40f   : > { %1018 = vrot.lane.b32.xlu1 %v791_v45, %s1407_s24 }
 0x410   : > { %v1318_v46 = vpop.f32.mrf.mxu0 }
 0x412   : > { %v794_v48 = vpop.f32.mrf.mxu0 }
 0x414   : > { %v1319_v49 = vpop.f32.mrf.mxu0 }
 0x416   : > { %v901_v50 = vpop.f32.mrf.mxu0 }
 0x417   : > { %1022 = vrot.lane.b32.xlu0 %v901_v50, %s1408_s27 }
 0x418   : > { %v1330_v51 = vpop.f32.mrf.mxu0 }
 0x41a   : > { %v904_v52 = vpop.f32.mrf.mxu0 }
 0x41c   : > { %v1331_v53 = vpop.f32.mrf.mxu0 }
 0x41e   : > { %v1011_v54 = vpop.f32.mrf.mxu0 }
 0x41f   : > { %1026 = vrot.lane.b32.xlu1 %v1011_v54, %s1409_s28 }
 0x420   : > { %v1342_v1 = vpop.f32.mrf.mxu0 }
 0x422   : > { %v1014_v55 = vpop.f32.mrf.mxu0 }
 0x424   : > { %v1343_v56 = vpop.f32.mrf.mxu0 }
 0x481   : > { %v1019_v57 = vpop.permute.xlu1 %1018 }
 0x482   : > { %v1029_v59 = vsel %vm578_vm2, %v678_v40, %v1019_v57 }
 0x489   : > { %v1023_v58 = vpop.permute.xlu0 %1022 }
 0x48a   : > { %v1031_v60 = vsel %vm1030_vm4, %v1029_v59, %v1023_v58 }
 0x491   : > { %v1027_v61 = vpop.permute.xlu1 %1026 }
 0x492   : > { %v1033_v62 = vsel %vm1032_vm5, %v1031_v60, %v1027_v61 }
 0x493   : > { %v1034_v63 = vpack.c.bf16 %v1033_v62, %v1033_v62 }
 0x495   : > { %1349 = vmatmul.mubr.msk.bf16.vlgmr.msra.gmra.mxu1 %vm409_vm1, %v1034_v63 }
 0x555   : > { %v1095_v2 = vpop.f32.mrf.mxu1 }
 0x556   : > { %v1096_v3 = vadd.f32 %v1236_v0, %v1095_v2 }
 0x557   : > { %v1350_v4 = vpop.f32.mrf.mxu1 }
 0x558   : > { %v1101_v5 = vadd.f32 %v1096_v3, %v1532_v23  ;;  %v1240_v23 = vld [vmem:[%s1621_s8] ss:$0 sm:$0xff] }
 0x559   : > { %v1098_v6 = vpop.f32.mrf.mxu1 }
 0x55a   : > { %v1104_v7 = vsel %vm409_vm1, %v1101_v5, 0.0 }
 0x55b   : > { %1105 = vadd.xlane.f32.xlu0 %v1104_v7  ;;  %v1351_v8 = vpop.f32.mrf.mxu1 }
 0x5e4   : > { %v1106_v9 = vpop.xlane.xlu0 %1105 }
 0x5e5   : > { %v1108_v10 = vmul.f32 0.03125, %v1106_v9 }
 0x5e7   : > { %v1109_v11 = vsub.f32 %v1101_v5, %v1108_v10 }
 0x5e9   : > { %v1110_v12 = vmul.f32 %v1109_v11, %v1109_v11 }
 0x5eb   : > { %v1111_v13 = vsel %vm409_vm1, %v1110_v12, 0.0 }
 0x5ec   : > { %1112 = vadd.xlane.f32.xlu1 %v1111_v13 }
 0x675   : > { %v1113_v14 = vpop.xlane.xlu1 %1112 }
 0x676   : > { %v1114_v15 = vmul.f32 0.03125, %v1113_v14 }
 0x678   : > { %v1115_v16 = vadd.f32 1e-05, %v1114_v15 }
 0x67a   : > { %1392 = vrsqrt.f32 %v1115_v16 }
 0x687   : > { %v1393_v17 = vpop.eup %1392 }
 0x688   : > { %v1117_v18 = vmul.f32 %v1393_v17, %v1109_v11 }
 0x68a   : > { %v1124_v20 = vmul.f32 %v1240_v23, %v1117_v18 }
 0x68c   : > { %v1131_v21 = vadd.f32 %v1241_v19, %v1124_v20 }
 0x68e   : > { %1132 = vst.msk [vmem:[%s388_s18] sm:$0xff] %vm409_vm1, %v1131_v21 }
 0x68f PF: > { %s20_s13 = sadd.s32 1, %s1400_s13  }
 0x690   : > { %p17_p4 = scmp.ge.s32.totalorder %s20_s13, 4  }
 0x692   :  { %19 = sbr.rel (!%p17_p4) target bundleno = 1 (0x1), region = 96 }

// kernel: transformer_forward.21
= control target key start
LH: loop header
LB: loop body
LE: loop exit
PB: predicated region body
PF: predicated region fallthrough
CT: control target
= control target key end

     0   :  { %v137_v0 = vmov 0.0   ;;  %vm138_vm0 = vmmov 0   ;;  %vm41_vm1 = vcmask 261120   ;;  %s180_s1 = inlined_call_operand.vmem [shape: bf16[32,128], index: 1, kind: input, shape index: {}]   ;;  %s181_s0 = inlined_call_operand.vmem [shape: f32[16,32], index: 0, kind: input, shape index: {}]   ;;  %s182_s2 = inlined_call_operand.vmem [shape: f32[1,128], index: 2, kind: input, shape index: {}]   ;;  %s183_s3 = inlined_call_operand.vmem [shape: f32[16,128], index: 3, kind: output, shape index: {}]  }
   0x1   :  { %117 = vmatprep.subr.bf16.mxu0 %v137_v0  ;;  %v127_v1 = vld [vmem:[%s180_s1 + $0x8] sm:$0xff]   ;;  %121 = vmatprep.mubr.msk.bf16.mxu0 %vm138_vm0, %v137_v0  ;;  %v128_v2 = vld [vmem:[%s180_s1] sm:$0xff]  }
   0x2   :  { %118 = vmatpush3.bf16.msra.mxu0 %v127_v1  ;;  %v15_v3 = vld [vmem:[%s181_s0] sm:$0xff]  ;;  %v16_v4 = vld [vmem:[%s181_s0 + $0x8] sm:$0xff] }
   0x3   :  { %119 = vmatprep.subr.bf16.mxu0 %v137_v0  ;;  %v17_v5 = vpack.c.bf16 %v16_v4, %v15_v3  ;;  %v110_v6 = vld [vmem:[%s182_s2] ss:$0 sm:$0xff] }
   0x6   :  { %120 = vmatpush3.bf16.msra.mxu0 %v128_v2 }
   0x9   :  { %122 = vmatmul.mubr.msk.bf16.vlgmr.msra.gmra.mxu0 %vm41_vm1, %v17_v5 }
  0xc9   :  { %v79_v7 = vpop.f32.mrf.mxu0 }
  0xca   :  { %v80_v8 = vadd.f32 %v110_v6, %v79_v7 }
  0xcb   :  { %v123_v9 = vpop.f32.mrf.mxu0 }
  0xcc   :  { %86 = vmax.xlane.f32.xlu0 %v80_v8 }
  0xcd   :  { %v82_v10 = vpop.f32.mrf.mxu0 }
  0xce   :  { %v83_v11 = vadd.f32 %v110_v6, %v82_v10 }
  0xcf   :  { %v124_v12 = vpop.f32.mrf.mxu0 }
  0xd0   :  { %88 = vmax.xlane.f32.xlu0 %v83_v11 }
 0x155   :  { %v87_v13 = vpop.xlane.xlu0 %86 }
 0x156   :  { %v90_v14 = vsub.f32 %v80_v8, %v87_v13 }
 0x158   :  { %v92_v15 = vmul.f32 1.442695, %v90_v14 }
 0x159   :  { %v89_v16 = vpop.xlane.xlu0 %88 }
 0x15a   :  { %129 = vpow2.f32 %v92_v15  ;;  %v91_v17 = vsub.f32 %v83_v11, %v89_v16 }
 0x15c   :  { %v94_v18 = vmul.f32 1.442695, %v91_v17 }
 0x15e   :  { %131 = vpow2.f32 %v94_v18 }
 0x167   :  { %v130_v19 = vpop.eup %129 }
 0x168   :  { %96 = vadd.xlane.f32.xlu1 %v130_v19 }
 0x16b   :  { %v132_v20 = vpop.eup %131 }
 0x16c   :  { %98 = vadd.xlane.f32.xlu1 %v132_v20 }
 0x1f1   :  { %v97_v21 = vpop.xlane.xlu1 %96 }
 0x1f2   :  { %133 = vrcp.f32 %v97_v21 }
 0x1f5   :  { %v99_v22 = vpop.xlane.xlu1 %98 }
 0x1f6   :  { %135 = vrcp.f32 %v99_v22 }
 0x1ff   :  { %v134_v23 = vpop.eup %133 }
 0x200   :  { %v101_v24 = vmul.f32 %v134_v23, %v130_v19 }
 0x202   :  { %104 = vst [vmem:[%s183_s3] sm:$0xff] %v101_v24 }
 0x203   :  { %v136_v25 = vpop.eup %135 }
 0x204   :  { %v103_v26 = vmul.f32 %v136_v25, %v132_v20 }
 0x206   :  { %105 = vst [vmem:[%s183_s3 + $0x8] sm:$0xff] %v103_v26 }

</bundles_post_ra>
